<compile_context>
chip_gen: v7x
topology: tpu7x:2x2x1
jax: 0.10.0
libtpu: 0.0.40
codegen_flags: <defaults>
</compile_context>

<pallas_src>
import functools

import jax
import jax.numpy as jnp
from jax import lax
from jax.experimental import pallas as pl
from jax.experimental.pallas import tpu as pltpu

# ----------------------- model config (synthetic, deterministic) ------------------
EMBEDDING_DIM = 32
EMOTIONS_NUM = 6
CONFIG = dict(hidden_size=32, num_layers=2, dropout=0.5)
VOCAB = 100

SUBLANE = 8          # batch padded to a multiple of this so every vreg sublane is used
C_PAD = 128          # FC output padded to a full lane width (lane-dense store)
B_TILE_MAX = 128     # batch tile per grid step (>=128 rows amortizes MXU fill at scale)


# ------------------------------ fused forward kernel -------------------------------
def _fused_rnn_kernel(num_layers, x_ref, *refs):
    """Fused LSTM(num_layers) -> mean over T -> FC (lane-dense padded output).

    x_ref : (T, B, E) time-major embedded inputs (VMEM block for this batch tile)
    refs  : [w_ih_t_0, w_hh_t_0, bias_0, ..., w_fc, b_fc, out, h_stash, gates_stash]
        w_ih_t_l : (in_l, 4H) bf16   W_ih^T, gate column order (i, f, o, g)
        w_hh_t_l : (H,   4H) bf16   W_hh^T, same gate order
        bias_l   : (1,   4H) f32    b_ih + b_hh (same gate order)
        w_fc     : (H, C_PAD) f32,  b_fc : (1, C_PAD) f32,  out : (B, C_PAD)
        h_stash     : VMEM (T, B, H)  f32  per-layer h sequence (reused across layers)
        gates_stash : VMEM (T, B, 4H) f32  batched input-projection gates for current layer
    """
    *lrefs, wfc_ref, bfc_ref, out_ref, h_stash, gates_stash = refs
    T, B, _ = x_ref.shape
    H = lrefs[1].shape[0]          # w_hh_t_0 is (H, 4H)

    def flat_time(ref):
        # (T, B, D) ref -> (T*B, D) value by concatenating 8-row-aligned slabs along the
        # sublane axis (B is a multiple of 8).  Static T loads, done once per layer.
        return jnp.concatenate([ref[t] for t in range(T)], axis=0)

    h_in_flat = flat_time(x_ref)   # (T*B, E) f32 — layer-0 input, time-major rows

    unroll = True if T <= 32 else 8

    for l in range(num_layers):
        w_ih = lrefs[3 * l][...]       # (in_l, 4H) bf16
        w_hh = lrefs[3 * l + 1][...]   # (H,   4H) bf16
        bias = lrefs[3 * l + 2][...]   # (1,   4H) f32

        # Batched non-recurrent input projection: ONE MXU pass at M = T*B, bias folded in.
        # Entirely off the recurrent critical path.
        gates_in = jnp.dot(h_in_flat.astype(jnp.bfloat16), w_ih,
                           preferred_element_type=jnp.float32) + bias      # (T*B, 4H) f32
        for t in range(T):             # static scatter into the time-indexed stash
            gates_stash[t] = gates_in[t * B:(t + 1) * B, :]

        def step(t, carry, w_hh=w_hh):
            h, c = carry
            # Per-step critical path: one K=H MXU pass + gate math only (no concat).
            g = gates_stash[t] + jnp.dot(h.astype(jnp.bfloat16), w_hh,
                                         preferred_element_type=jnp.float32)  # (B, 4H)
            # Gate order (i, f, o, g): sigmoid over one contiguous 3H range, tanh over H.
            sig = jax.nn.sigmoid(g[:, : 3 * H])
            i_g = sig[:, 0 * H:1 * H]
            f_g = sig[:, 1 * H:2 * H]
            o_g = sig[:, 2 * H:3 * H]
            g_g = jnp.tanh(g[:, 3 * H:])
            c_new = f_g * c + i_g * g_g
            h_new = o_g * jnp.tanh(c_new)
            h_stash[t] = h_new          # feeds next layer's projection / final time-mean
            return (h_new, c_new)

        z = jnp.zeros((B, H), jnp.float32)
        lax.fori_loop(0, T, step, (z, z), unroll=unroll)

        if l + 1 < num_layers:
            h_in_flat = flat_time(h_stash)     # (T*B, H) input for the next layer

    # Mean over time of the top layer's h, then lane-dense (C_PAD-wide) FC.
    mean_h = jnp.sum(h_stash[...], axis=0) * (1.0 / T)                     # (B, H)
    out_ref[...] = (jnp.dot(mean_h, wfc_ref[...], preferred_element_type=jnp.float32)
                    + bfc_ref[...]).astype(out_ref.dtype)


def fused_forward(x_tbe, params, b_tile):
    """x_tbe: (T, Bp, E) time-major embedded input -> (Bp, C_PAD) logits, one pallas_call."""
    T, Bp, E = x_tbe.shape
    layers = params["lstm"]
    num_layers = len(layers)
    H = layers[0]["w_hh_t"].shape[0]

    vmem = pltpu.MemorySpace.VMEM

    args = [x_tbe]
    in_specs = [pl.BlockSpec((T, b_tile, E), lambda b: (0, b, 0), memory_space=vmem)]
    for layer in layers:
        for name in ("w_ih_t", "w_hh_t", "bias"):
            w = layer[name]
            args.append(w)
            # Whole-array resident weight; same block index every grid step -> DMA'd once.
            in_specs.append(pl.BlockSpec(w.shape, lambda b: (0, 0), memory_space=vmem))
    for name in ("w_fc_t", "b_fc"):
        w = params[name]
        args.append(w)
        in_specs.append(pl.BlockSpec(w.shape, lambda b: (0, 0), memory_space=vmem))

    return pl.pallas_call(
        functools.partial(_fused_rnn_kernel, num_layers),
        grid=(Bp // b_tile,),
        in_specs=in_specs,
        out_specs=pl.BlockSpec((b_tile, C_PAD), lambda b: (b, 0), memory_space=vmem),
        out_shape=jax.ShapeDtypeStruct((Bp, C_PAD), jnp.float32),
        scratch_shapes=[
            pltpu.VMEM((T, b_tile, H), jnp.float32),        # per-layer h sequence stash
            pltpu.VMEM((T, b_tile, 4 * H), jnp.float32),    # batched input-projection gates
        ],
        compiler_params=pltpu.CompilerParams(
            dimension_semantics=("parallel",)),             # batch tiles -> megacore / 2nd TC
    )(*args)


# --------------------------------- full forward ------------------------------------
@jax.jit
def rnn_forward(texts, params):
    B, _ = texts.shape
    emb = params["embedding"]                        # (VOCAB, E)

    # Pad batch to a sublane multiple, then to a multiple of the batch tile.
    Bp = B + ((-B) % SUBLANE)
    b_tile = min(B_TILE_MAX, Bp)
    Bp = Bp + ((-Bp) % b_tile)
    texts_p = jnp.pad(texts, ((0, Bp - B), (0, 0)))  # (Bp, T); padded rows use token 0

    x = jnp.take(emb, texts_p, axis=0)               # (Bp, T, E) embedding gather (JAX glue)
    # Dropout: identity at inference. TODO(synk): training-mode dropout not implemented.
    x = jnp.transpose(x, (1, 0, 2)).astype(jnp.float32)   # (T, Bp, E) time-major

    logits_p = fused_forward(x, params, b_tile)      # (Bp, C_PAD)
    return logits_p[:B, :EMOTIONS_NUM]               # drop padded rows + padded FC columns


def init_params(key):
    E, H, C, L = EMBEDDING_DIM, CONFIG["hidden_size"], EMOTIONS_NUM, CONFIG["num_layers"]
    keys = jax.random.split(key, 3 + 4 * L)
    k = 1.0 / jnp.sqrt(H)

    embedding = jax.random.normal(keys[0], (VOCAB, E), jnp.float32)

    # Permute gate blocks from PyTorch order (i, f, g, o) to kernel order (i, f, o, g)
    # so the kernel can run sigmoid on one contiguous 3H lane range.
    perm = jnp.concatenate([jnp.arange(0, H), jnp.arange(H, 2 * H),
                            jnp.arange(3 * H, 4 * H), jnp.arange(2 * H, 3 * H)])

    lstm = []
    for l in range(L):
        in_dim = E if l == 0 else H
        kw = keys[3 + 4 * l: 3 + 4 * (l + 1)]
        w_ih = jax.random.uniform(kw[0], (4 * H, in_dim), jnp.float32, -k, k)
        w_hh = jax.random.uniform(kw[1], (4 * H, H), jnp.float32, -k, k)
        b_ih = jax.random.uniform(kw[2], (4 * H,), jnp.float32, -k, k)
        b_hh = jax.random.uniform(kw[3], (4 * H,), jnp.float32, -k, k)
        lstm.append(dict(
            w_ih_t=jnp.asarray(w_ih[perm].T, jnp.bfloat16),   # (in_dim, 4H) bf16 (MXU-native)
            w_hh_t=jnp.asarray(w_hh[perm].T, jnp.bfloat16),   # (H, 4H)     bf16
            bias=((b_ih + b_hh)[perm])[None, :],              # (1, 4H)     f32
        ))

    w_fc = jax.random.uniform(keys[1], (C, H), jnp.float32, -k, k)
    b_fc = jax.random.uniform(keys[2], (C,), jnp.float32, -k, k)
    # Lane-dense padded FC: extra columns are zero and sliced off in the wrapper.
    w_fc_t = jnp.zeros((H, C_PAD), jnp.float32).at[:, :C].set(w_fc.T)
    b_fc_p = jnp.zeros((1, C_PAD), jnp.float32).at[:, :C].set(b_fc[None, :])

    return dict(embedding=embedding, lstm=lstm, w_fc_t=w_fc_t, b_fc=b_fc_p)


if __name__ == "__main__":
    key = jax.random.PRNGKey(0)
    k_param, k_text = jax.random.split(key)

    B, T = 2, 8
    texts = jax.random.randint(k_text, (B, T), 0, VOCAB, dtype=jnp.int32)
    params = init_params(k_param)

    logits = rnn_forward(texts, params)
    jax.block_until_ready(logits)
    assert logits.shape == (B, EMOTIONS_NUM)
    print("KERNEL_OK")
</pallas_src>

<mosaic_0001>
module attributes {stable_mosaic.version = 11 : i64} {
  func.func @_fused_rnn_kernel(%arg0: i32, %arg1: memref<8x8x32xf32, #tpu.memory_space<vmem>>, %arg2: memref<32x128xbf16, #tpu.memory_space<vmem>>, %arg3: memref<32x128xbf16, #tpu.memory_space<vmem>>, %arg4: memref<1x128xf32, #tpu.memory_space<vmem>>, %arg5: memref<32x128xbf16, #tpu.memory_space<vmem>>, %arg6: memref<32x128xbf16, #tpu.memory_space<vmem>>, %arg7: memref<1x128xf32, #tpu.memory_space<vmem>>, %arg8: memref<32x128xf32, #tpu.memory_space<vmem>>, %arg9: memref<1x128xf32, #tpu.memory_space<vmem>>, %arg10: memref<8x128xf32, #tpu.memory_space<vmem>>, %arg11: memref<8x8x32xf32, #tpu.memory_space<vmem>>, %arg12: memref<8x8x128xf32, #tpu.memory_space<vmem>>) attributes {dimension_semantics = [#tpu.dimension_semantics<parallel>], iteration_bounds = array<i64: 1>, scalar_prefetch = 0 : i64, scratch_operands = 2 : i64, tpu.core_type = #tpu.core_type<tc>, window_params = [{transform_indices = @transform_0, window_bounds = array<i64: 8, 8, 32>}, {pipeline_mode = #tpu.pipeline_mode<synchronous>, transform_indices = @transform_1, window_bounds = array<i64: 32, 128>}, {pipeline_mode = #tpu.pipeline_mode<synchronous>, transform_indices = @transform_2, window_bounds = array<i64: 32, 128>}, {pipeline_mode = #tpu.pipeline_mode<synchronous>, transform_indices = @transform_3, window_bounds = array<i64: 1, 128>}, {pipeline_mode = #tpu.pipeline_mode<synchronous>, transform_indices = @transform_4, window_bounds = array<i64: 32, 128>}, {pipeline_mode = #tpu.pipeline_mode<synchronous>, transform_indices = @transform_5, window_bounds = array<i64: 32, 128>}, {pipeline_mode = #tpu.pipeline_mode<synchronous>, transform_indices = @transform_6, window_bounds = array<i64: 1, 128>}, {pipeline_mode = #tpu.pipeline_mode<synchronous>, transform_indices = @transform_7, window_bounds = array<i64: 32, 128>}, {pipeline_mode = #tpu.pipeline_mode<synchronous>, transform_indices = @transform_8, window_bounds = array<i64: 1, 128>}, {transform_indices = @transform_9, window_bounds = array<i64: 8, 128>}]} {
    %c0 = arith.constant 0 : index
    %c0_0 = arith.constant 0 : index
    %c0_1 = arith.constant 0 : index
    %0 = vector.load %arg1[%c0, %c0_0, %c0_1] : memref<8x8x32xf32, #tpu.memory_space<vmem>>, vector<1x8x32xf32>
    %1 = vector.shape_cast %0 : vector<1x8x32xf32> to vector<8x32xf32>
    %c1 = arith.constant 1 : index
    %c0_2 = arith.constant 0 : index
    %c0_3 = arith.constant 0 : index
    %2 = vector.load %arg1[%c1, %c0_2, %c0_3] : memref<8x8x32xf32, #tpu.memory_space<vmem>>, vector<1x8x32xf32>
    %3 = vector.shape_cast %2 : vector<1x8x32xf32> to vector<8x32xf32>
    %c2 = arith.constant 2 : index
    %c0_4 = arith.constant 0 : index
    %c0_5 = arith.constant 0 : index
    %4 = vector.load %arg1[%c2, %c0_4, %c0_5] : memref<8x8x32xf32, #tpu.memory_space<vmem>>, vector<1x8x32xf32>
    %5 = vector.shape_cast %4 : vector<1x8x32xf32> to vector<8x32xf32>
    %c3 = arith.constant 3 : index
    %c0_6 = arith.constant 0 : index
    %c0_7 = arith.constant 0 : index
    %6 = vector.load %arg1[%c3, %c0_6, %c0_7] : memref<8x8x32xf32, #tpu.memory_space<vmem>>, vector<1x8x32xf32>
    %7 = vector.shape_cast %6 : vector<1x8x32xf32> to vector<8x32xf32>
    %c4 = arith.constant 4 : index
    %c0_8 = arith.constant 0 : index
    %c0_9 = arith.constant 0 : index
    %8 = vector.load %arg1[%c4, %c0_8, %c0_9] : memref<8x8x32xf32, #tpu.memory_space<vmem>>, vector<1x8x32xf32>
    %9 = vector.shape_cast %8 : vector<1x8x32xf32> to vector<8x32xf32>
    %c5 = arith.constant 5 : index
    %c0_10 = arith.constant 0 : index
    %c0_11 = arith.constant 0 : index
    %10 = vector.load %arg1[%c5, %c0_10, %c0_11] : memref<8x8x32xf32, #tpu.memory_space<vmem>>, vector<1x8x32xf32>
    %11 = vector.shape_cast %10 : vector<1x8x32xf32> to vector<8x32xf32>
    %c6 = arith.constant 6 : index
    %c0_12 = arith.constant 0 : index
    %c0_13 = arith.constant 0 : index
    %12 = vector.load %arg1[%c6, %c0_12, %c0_13] : memref<8x8x32xf32, #tpu.memory_space<vmem>>, vector<1x8x32xf32>
    %13 = vector.shape_cast %12 : vector<1x8x32xf32> to vector<8x32xf32>
    %c7 = arith.constant 7 : index
    %c0_14 = arith.constant 0 : index
    %c0_15 = arith.constant 0 : index
    %14 = vector.load %arg1[%c7, %c0_14, %c0_15] : memref<8x8x32xf32, #tpu.memory_space<vmem>>, vector<1x8x32xf32>
    %15 = vector.shape_cast %14 : vector<1x8x32xf32> to vector<8x32xf32>
    %16 = tpu.concatenate %1, %3, %5, %7, %9, %11, %13, %15 in 0 : vector<8x32xf32>, vector<8x32xf32>, vector<8x32xf32>, vector<8x32xf32>, vector<8x32xf32>, vector<8x32xf32>, vector<8x32xf32>, vector<8x32xf32> -> vector<64x32xf32>
    %c0_16 = arith.constant 0 : index
    %c0_17 = arith.constant 0 : index
    %17 = vector.load %arg2[%c0_16, %c0_17] : memref<32x128xbf16, #tpu.memory_space<vmem>>, vector<32x128xbf16>
    %c0_18 = arith.constant 0 : index
    %c0_19 = arith.constant 0 : index
    %18 = vector.load %arg3[%c0_18, %c0_19] : memref<32x128xbf16, #tpu.memory_space<vmem>>, vector<32x128xbf16>
    %c0_20 = arith.constant 0 : index
    %c0_21 = arith.constant 0 : index
    %19 = vector.load %arg4[%c0_20, %c0_21] : memref<1x128xf32, #tpu.memory_space<vmem>>, vector<1x128xf32>
    %20 = arith.truncf %16 : vector<64x32xf32> to vector<64x32xbf16>
    %cst = arith.constant dense<0.000000e+00> : vector<64x128xf32>
    %21 = tpu.matmul %20, %17, %cst {dimension_numbers = #tpu.dot_dimension_numbers<[1], [0], [0], [1], [0, 0, 1, 1], [], []>} : vector<64x32xbf16>, vector<32x128xbf16>, vector<64x128xf32> -> vector<64x128xf32>
    %22 = vector.broadcast %19 : vector<1x128xf32> to vector<64x128xf32>
    %23 = arith.addf %21, %22 : vector<64x128xf32>
    %24 = vector.extract_strided_slice %23 {offsets = [0, 0], sizes = [8, 128], strides = [1, 1]} : vector<64x128xf32> to vector<8x128xf32>
    %c0_22 = arith.constant 0 : index
    %c0_23 = arith.constant 0 : index
    %c0_24 = arith.constant 0 : index
    %25 = vector.load %arg12[%c0_22, %c0_23, %c0_24] : memref<8x8x128xf32, #tpu.memory_space<vmem>>, vector<1x8x128xf32>
    %26 = vector.shape_cast %25 : vector<1x8x128xf32> to vector<8x128xf32>
    %27 = vector.shape_cast %24 : vector<8x128xf32> to vector<1x8x128xf32>
    tpu.vector_store %arg12[%c0_22, %c0_23, %c0_24], %27 {strides = array<i32>} : memref<8x8x128xf32, #tpu.memory_space<vmem>>, vector<1x8x128xf32>,
    %28 = vector.extract_strided_slice %23 {offsets = [8, 0], sizes = [8, 128], strides = [1, 1]} : vector<64x128xf32> to vector<8x128xf32>
    %c1_25 = arith.constant 1 : index
    %c0_26 = arith.constant 0 : index
    %c0_27 = arith.constant 0 : index
    %29 = vector.load %arg12[%c1_25, %c0_26, %c0_27] : memref<8x8x128xf32, #tpu.memory_space<vmem>>, vector<1x8x128xf32>
    %30 = vector.shape_cast %29 : vector<1x8x128xf32> to vector<8x128xf32>
    %31 = vector.shape_cast %28 : vector<8x128xf32> to vector<1x8x128xf32>
    tpu.vector_store %arg12[%c1_25, %c0_26, %c0_27], %31 {strides = array<i32>} : memref<8x8x128xf32, #tpu.memory_space<vmem>>, vector<1x8x128xf32>,
    %32 = vector.extract_strided_slice %23 {offsets = [16, 0], sizes = [8, 128], strides = [1, 1]} : vector<64x128xf32> to vector<8x128xf32>
    %c2_28 = arith.constant 2 : index
    %c0_29 = arith.constant 0 : index
    %c0_30 = arith.constant 0 : index
    %33 = vector.load %arg12[%c2_28, %c0_29, %c0_30] : memref<8x8x128xf32, #tpu.memory_space<vmem>>, vector<1x8x128xf32>
    %34 = vector.shape_cast %33 : vector<1x8x128xf32> to vector<8x128xf32>
    %35 = vector.shape_cast %32 : vector<8x128xf32> to vector<1x8x128xf32>
    tpu.vector_store %arg12[%c2_28, %c0_29, %c0_30], %35 {strides = array<i32>} : memref<8x8x128xf32, #tpu.memory_space<vmem>>, vector<1x8x128xf32>,
    %36 = vector.extract_strided_slice %23 {offsets = [24, 0], sizes = [8, 128], strides = [1, 1]} : vector<64x128xf32> to vector<8x128xf32>
    %c3_31 = arith.constant 3 : index
    %c0_32 = arith.constant 0 : index
    %c0_33 = arith.constant 0 : index
    %37 = vector.load %arg12[%c3_31, %c0_32, %c0_33] : memref<8x8x128xf32, #tpu.memory_space<vmem>>, vector<1x8x128xf32>
    %38 = vector.shape_cast %37 : vector<1x8x128xf32> to vector<8x128xf32>
    %39 = vector.shape_cast %36 : vector<8x128xf32> to vector<1x8x128xf32>
    tpu.vector_store %arg12[%c3_31, %c0_32, %c0_33], %39 {strides = array<i32>} : memref<8x8x128xf32, #tpu.memory_space<vmem>>, vector<1x8x128xf32>,
    %40 = vector.extract_strided_slice %23 {offsets = [32, 0], sizes = [8, 128], strides = [1, 1]} : vector<64x128xf32> to vector<8x128xf32>
    %c4_34 = arith.constant 4 : index
    %c0_35 = arith.constant 0 : index
    %c0_36 = arith.constant 0 : index
    %41 = vector.load %arg12[%c4_34, %c0_35, %c0_36] : memref<8x8x128xf32, #tpu.memory_space<vmem>>, vector<1x8x128xf32>
    %42 = vector.shape_cast %41 : vector<1x8x128xf32> to vector<8x128xf32>
    %43 = vector.shape_cast %40 : vector<8x128xf32> to vector<1x8x128xf32>
    tpu.vector_store %arg12[%c4_34, %c0_35, %c0_36], %43 {strides = array<i32>} : memref<8x8x128xf32, #tpu.memory_space<vmem>>, vector<1x8x128xf32>,
    %44 = vector.extract_strided_slice %23 {offsets = [40, 0], sizes = [8, 128], strides = [1, 1]} : vector<64x128xf32> to vector<8x128xf32>
    %c5_37 = arith.constant 5 : index
    %c0_38 = arith.constant 0 : index
    %c0_39 = arith.constant 0 : index
    %45 = vector.load %arg12[%c5_37, %c0_38, %c0_39] : memref<8x8x128xf32, #tpu.memory_space<vmem>>, vector<1x8x128xf32>
    %46 = vector.shape_cast %45 : vector<1x8x128xf32> to vector<8x128xf32>
    %47 = vector.shape_cast %44 : vector<8x128xf32> to vector<1x8x128xf32>
    tpu.vector_store %arg12[%c5_37, %c0_38, %c0_39], %47 {strides = array<i32>} : memref<8x8x128xf32, #tpu.memory_space<vmem>>, vector<1x8x128xf32>,
    %48 = vector.extract_strided_slice %23 {offsets = [48, 0], sizes = [8, 128], strides = [1, 1]} : vector<64x128xf32> to vector<8x128xf32>
    %c6_40 = arith.constant 6 : index
    %c0_41 = arith.constant 0 : index
    %c0_42 = arith.constant 0 : index
    %49 = vector.load %arg12[%c6_40, %c0_41, %c0_42] : memref<8x8x128xf32, #tpu.memory_space<vmem>>, vector<1x8x128xf32>
    %50 = vector.shape_cast %49 : vector<1x8x128xf32> to vector<8x128xf32>
    %51 = vector.shape_cast %48 : vector<8x128xf32> to vector<1x8x128xf32>
    tpu.vector_store %arg12[%c6_40, %c0_41, %c0_42], %51 {strides = array<i32>} : memref<8x8x128xf32, #tpu.memory_space<vmem>>, vector<1x8x128xf32>,
    %52 = vector.extract_strided_slice %23 {offsets = [56, 0], sizes = [8, 128], strides = [1, 1]} : vector<64x128xf32> to vector<8x128xf32>
    %c7_43 = arith.constant 7 : index
    %c0_44 = arith.constant 0 : index
    %c0_45 = arith.constant 0 : index
    %53 = vector.load %arg12[%c7_43, %c0_44, %c0_45] : memref<8x8x128xf32, #tpu.memory_space<vmem>>, vector<1x8x128xf32>
    %54 = vector.shape_cast %53 : vector<1x8x128xf32> to vector<8x128xf32>
    %55 = vector.shape_cast %52 : vector<8x128xf32> to vector<1x8x128xf32>
    tpu.vector_store %arg12[%c7_43, %c0_44, %c0_45], %55 {strides = array<i32>} : memref<8x8x128xf32, #tpu.memory_space<vmem>>, vector<1x8x128xf32>,
    %cst_46 = arith.constant 0.000000e+00 : f32
    %56 = vector.broadcast %cst_46 : f32 to vector<8x32xf32>
    %c0_i32 = arith.constant 0 : i32
    %57 = arith.index_cast %c0_i32 : i32 to index
    %c0_47 = arith.constant 0 : index
    %c0_48 = arith.constant 0 : index
    %58 = vector.load %arg12[%57, %c0_47, %c0_48] : memref<8x8x128xf32, #tpu.memory_space<vmem>>, vector<1x8x128xf32>
    %59 = vector.shape_cast %58 : vector<1x8x128xf32> to vector<8x128xf32>
    %60 = arith.truncf %56 : vector<8x32xf32> to vector<8x32xbf16>
    %cst_49 = arith.constant dense<0.000000e+00> : vector<8x128xf32>
    %61 = tpu.matmul %60, %18, %cst_49 {dimension_numbers = #tpu.dot_dimension_numbers<[1], [0], [0], [1], [0, 0, 1, 1], [], []>} : vector<8x32xbf16>, vector<32x128xbf16>, vector<8x128xf32> -> vector<8x128xf32>
    %62 = arith.addf %59, %61 : vector<8x128xf32>
    %63 = vector.extract_strided_slice %62 {offsets = [0, 0], sizes = [8, 96], strides = [1, 1]} : vector<8x128xf32> to vector<8x96xf32>
    %64 = arith.negf %63 : vector<8x96xf32>
    %65 = math.exp %64 : vector<8x96xf32>
    %cst_50 = arith.constant 1.000000e+00 : f32
    %66 = vector.broadcast %cst_50 : f32 to vector<8x96xf32>
    %67 = arith.addf %66, %65 : vector<8x96xf32>
    %68 = arith.divf %66, %67 : vector<8x96xf32>
    %69 = vector.extract_strided_slice %68 {offsets = [0, 0], sizes = [8, 32], strides = [1, 1]} : vector<8x96xf32> to vector<8x32xf32>
    %70 = vector.extract_strided_slice %68 {offsets = [0, 32], sizes = [8, 32], strides = [1, 1]} : vector<8x96xf32> to vector<8x32xf32>
    %71 = vector.extract_strided_slice %68 {offsets = [0, 64], sizes = [8, 32], strides = [1, 1]} : vector<8x96xf32> to vector<8x32xf32>
    %72 = vector.extract_strided_slice %62 {offsets = [0, 96], sizes = [8, 32], strides = [1, 1]} : vector<8x128xf32> to vector<8x32xf32>
    %73 = math.tanh %72 : vector<8x32xf32>
    %74 = arith.mulf %70, %56 : vector<8x32xf32>
    %75 = arith.mulf %69, %73 : vector<8x32xf32>
    %76 = arith.addf %74, %75 : vector<8x32xf32>
    %77 = math.tanh %76 : vector<8x32xf32>
    %78 = arith.mulf %71, %77 : vector<8x32xf32>
    %79 = arith.index_cast %c0_i32 : i32 to index
    %c0_51 = arith.constant 0 : index
    %c0_52 = arith.constant 0 : index
    %80 = vector.load %arg11[%79, %c0_51, %c0_52] : memref<8x8x32xf32, #tpu.memory_space<vmem>>, vector<1x8x32xf32>
    %81 = vector.shape_cast %80 : vector<1x8x32xf32> to vector<8x32xf32>
    %82 = vector.shape_cast %78 : vector<8x32xf32> to vector<1x8x32xf32>
    tpu.vector_store %arg11[%79, %c0_51, %c0_52], %82 {strides = array<i32>} : memref<8x8x32xf32, #tpu.memory_space<vmem>>, vector<1x8x32xf32>,
    %c1_i32 = arith.constant 1 : i32
    %83 = arith.index_cast %c1_i32 : i32 to index
    %c0_53 = arith.constant 0 : index
    %c0_54 = arith.constant 0 : index
    %84 = vector.load %arg12[%83, %c0_53, %c0_54] : memref<8x8x128xf32, #tpu.memory_space<vmem>>, vector<1x8x128xf32>
    %85 = vector.shape_cast %84 : vector<1x8x128xf32> to vector<8x128xf32>
    %86 = arith.truncf %78 : vector<8x32xf32> to vector<8x32xbf16>
    %cst_55 = arith.constant dense<0.000000e+00> : vector<8x128xf32>
    %87 = tpu.matmul %86, %18, %cst_55 {dimension_numbers = #tpu.dot_dimension_numbers<[1], [0], [0], [1], [0, 0, 1, 1], [], []>} : vector<8x32xbf16>, vector<32x128xbf16>, vector<8x128xf32> -> vector<8x128xf32>
    %88 = arith.addf %85, %87 : vector<8x128xf32>
    %89 = vector.extract_strided_slice %88 {offsets = [0, 0], sizes = [8, 96], strides = [1, 1]} : vector<8x128xf32> to vector<8x96xf32>
    %90 = arith.negf %89 : vector<8x96xf32>
    %91 = math.exp %90 : vector<8x96xf32>
    %cst_56 = arith.constant 1.000000e+00 : f32
    %92 = vector.broadcast %cst_56 : f32 to vector<8x96xf32>
    %93 = arith.addf %92, %91 : vector<8x96xf32>
    %94 = arith.divf %92, %93 : vector<8x96xf32>
    %95 = vector.extract_strided_slice %94 {offsets = [0, 0], sizes = [8, 32], strides = [1, 1]} : vector<8x96xf32> to vector<8x32xf32>
    %96 = vector.extract_strided_slice %94 {offsets = [0, 32], sizes = [8, 32], strides = [1, 1]} : vector<8x96xf32> to vector<8x32xf32>
    %97 = vector.extract_strided_slice %94 {offsets = [0, 64], sizes = [8, 32], strides = [1, 1]} : vector<8x96xf32> to vector<8x32xf32>
    %98 = vector.extract_strided_slice %88 {offsets = [0, 96], sizes = [8, 32], strides = [1, 1]} : vector<8x128xf32> to vector<8x32xf32>
    %99 = math.tanh %98 : vector<8x32xf32>
    %100 = arith.mulf %96, %76 : vector<8x32xf32>
    %101 = arith.mulf %95, %99 : vector<8x32xf32>
    %102 = arith.addf %100, %101 : vector<8x32xf32>
    %103 = math.tanh %102 : vector<8x32xf32>
    %104 = arith.mulf %97, %103 : vector<8x32xf32>
    %105 = arith.index_cast %c1_i32 : i32 to index
    %c0_57 = arith.constant 0 : index
    %c0_58 = arith.constant 0 : index
    %106 = vector.load %arg11[%105, %c0_57, %c0_58] : memref<8x8x32xf32, #tpu.memory_space<vmem>>, vector<1x8x32xf32>
    %107 = vector.shape_cast %106 : vector<1x8x32xf32> to vector<8x32xf32>
    %108 = vector.shape_cast %104 : vector<8x32xf32> to vector<1x8x32xf32>
    tpu.vector_store %arg11[%105, %c0_57, %c0_58], %108 {strides = array<i32>} : memref<8x8x32xf32, #tpu.memory_space<vmem>>, vector<1x8x32xf32>,
    %c2_i32 = arith.constant 2 : i32
    %109 = arith.index_cast %c2_i32 : i32 to index
    %c0_59 = arith.constant 0 : index
    %c0_60 = arith.constant 0 : index
    %110 = vector.load %arg12[%109, %c0_59, %c0_60] : memref<8x8x128xf32, #tpu.memory_space<vmem>>, vector<1x8x128xf32>
    %111 = vector.shape_cast %110 : vector<1x8x128xf32> to vector<8x128xf32>
    %112 = arith.truncf %104 : vector<8x32xf32> to vector<8x32xbf16>
    %cst_61 = arith.constant dense<0.000000e+00> : vector<8x128xf32>
    %113 = tpu.matmul %112, %18, %cst_61 {dimension_numbers = #tpu.dot_dimension_numbers<[1], [0], [0], [1], [0, 0, 1, 1], [], []>} : vector<8x32xbf16>, vector<32x128xbf16>, vector<8x128xf32> -> vector<8x128xf32>
    %114 = arith.addf %111, %113 : vector<8x128xf32>
    %115 = vector.extract_strided_slice %114 {offsets = [0, 0], sizes = [8, 96], strides = [1, 1]} : vector<8x128xf32> to vector<8x96xf32>
    %116 = arith.negf %115 : vector<8x96xf32>
    %117 = math.exp %116 : vector<8x96xf32>
    %cst_62 = arith.constant 1.000000e+00 : f32
    %118 = vector.broadcast %cst_62 : f32 to vector<8x96xf32>
    %119 = arith.addf %118, %117 : vector<8x96xf32>
    %120 = arith.divf %118, %119 : vector<8x96xf32>
    %121 = vector.extract_strided_slice %120 {offsets = [0, 0], sizes = [8, 32], strides = [1, 1]} : vector<8x96xf32> to vector<8x32xf32>
    %122 = vector.extract_strided_slice %120 {offsets = [0, 32], sizes = [8, 32], strides = [1, 1]} : vector<8x96xf32> to vector<8x32xf32>
    %123 = vector.extract_strided_slice %120 {offsets = [0, 64], sizes = [8, 32], strides = [1, 1]} : vector<8x96xf32> to vector<8x32xf32>
    %124 = vector.extract_strided_slice %114 {offsets = [0, 96], sizes = [8, 32], strides = [1, 1]} : vector<8x128xf32> to vector<8x32xf32>
    %125 = math.tanh %124 : vector<8x32xf32>
    %126 = arith.mulf %122, %102 : vector<8x32xf32>
    %127 = arith.mulf %121, %125 : vector<8x32xf32>
    %128 = arith.addf %126, %127 : vector<8x32xf32>
    %129 = math.tanh %128 : vector<8x32xf32>
    %130 = arith.mulf %123, %129 : vector<8x32xf32>
    %131 = arith.index_cast %c2_i32 : i32 to index
    %c0_63 = arith.constant 0 : index
    %c0_64 = arith.constant 0 : index
    %132 = vector.load %arg11[%131, %c0_63, %c0_64] : memref<8x8x32xf32, #tpu.memory_space<vmem>>, vector<1x8x32xf32>
    %133 = vector.shape_cast %132 : vector<1x8x32xf32> to vector<8x32xf32>
    %134 = vector.shape_cast %130 : vector<8x32xf32> to vector<1x8x32xf32>
    tpu.vector_store %arg11[%131, %c0_63, %c0_64], %134 {strides = array<i32>} : memref<8x8x32xf32, #tpu.memory_space<vmem>>, vector<1x8x32xf32>,
    %c3_i32 = arith.constant 3 : i32
    %135 = arith.index_cast %c3_i32 : i32 to index
    %c0_65 = arith.constant 0 : index
    %c0_66 = arith.constant 0 : index
    %136 = vector.load %arg12[%135, %c0_65, %c0_66] : memref<8x8x128xf32, #tpu.memory_space<vmem>>, vector<1x8x128xf32>
    %137 = vector.shape_cast %136 : vector<1x8x128xf32> to vector<8x128xf32>
    %138 = arith.truncf %130 : vector<8x32xf32> to vector<8x32xbf16>
    %cst_67 = arith.constant dense<0.000000e+00> : vector<8x128xf32>
    %139 = tpu.matmul %138, %18, %cst_67 {dimension_numbers = #tpu.dot_dimension_numbers<[1], [0], [0], [1], [0, 0, 1, 1], [], []>} : vector<8x32xbf16>, vector<32x128xbf16>, vector<8x128xf32> -> vector<8x128xf32>
    %140 = arith.addf %137, %139 : vector<8x128xf32>
    %141 = vector.extract_strided_slice %140 {offsets = [0, 0], sizes = [8, 96], strides = [1, 1]} : vector<8x128xf32> to vector<8x96xf32>
    %142 = arith.negf %141 : vector<8x96xf32>
    %143 = math.exp %142 : vector<8x96xf32>
    %cst_68 = arith.constant 1.000000e+00 : f32
    %144 = vector.broadcast %cst_68 : f32 to vector<8x96xf32>
    %145 = arith.addf %144, %143 : vector<8x96xf32>
    %146 = arith.divf %144, %145 : vector<8x96xf32>
    %147 = vector.extract_strided_slice %146 {offsets = [0, 0], sizes = [8, 32], strides = [1, 1]} : vector<8x96xf32> to vector<8x32xf32>
    %148 = vector.extract_strided_slice %146 {offsets = [0, 32], sizes = [8, 32], strides = [1, 1]} : vector<8x96xf32> to vector<8x32xf32>
    %149 = vector.extract_strided_slice %146 {offsets = [0, 64], sizes = [8, 32], strides = [1, 1]} : vector<8x96xf32> to vector<8x32xf32>
    %150 = vector.extract_strided_slice %140 {offsets = [0, 96], sizes = [8, 32], strides = [1, 1]} : vector<8x128xf32> to vector<8x32xf32>
    %151 = math.tanh %150 : vector<8x32xf32>
    %152 = arith.mulf %148, %128 : vector<8x32xf32>
    %153 = arith.mulf %147, %151 : vector<8x32xf32>
    %154 = arith.addf %152, %153 : vector<8x32xf32>
    %155 = math.tanh %154 : vector<8x32xf32>
    %156 = arith.mulf %149, %155 : vector<8x32xf32>
    %157 = arith.index_cast %c3_i32 : i32 to index
    %c0_69 = arith.constant 0 : index
    %c0_70 = arith.constant 0 : index
    %158 = vector.load %arg11[%157, %c0_69, %c0_70] : memref<8x8x32xf32, #tpu.memory_space<vmem>>, vector<1x8x32xf32>
    %159 = vector.shape_cast %158 : vector<1x8x32xf32> to vector<8x32xf32>
    %160 = vector.shape_cast %156 : vector<8x32xf32> to vector<1x8x32xf32>
    tpu.vector_store %arg11[%157, %c0_69, %c0_70], %160 {strides = array<i32>} : memref<8x8x32xf32, #tpu.memory_space<vmem>>, vector<1x8x32xf32>,
    %c4_i32 = arith.constant 4 : i32
    %161 = arith.index_cast %c4_i32 : i32 to index
    %c0_71 = arith.constant 0 : index
    %c0_72 = arith.constant 0 : index
    %162 = vector.load %arg12[%161, %c0_71, %c0_72] : memref<8x8x128xf32, #tpu.memory_space<vmem>>, vector<1x8x128xf32>
    %163 = vector.shape_cast %162 : vector<1x8x128xf32> to vector<8x128xf32>
    %164 = arith.truncf %156 : vector<8x32xf32> to vector<8x32xbf16>
    %cst_73 = arith.constant dense<0.000000e+00> : vector<8x128xf32>
    %165 = tpu.matmul %164, %18, %cst_73 {dimension_numbers = #tpu.dot_dimension_numbers<[1], [0], [0], [1], [0, 0, 1, 1], [], []>} : vector<8x32xbf16>, vector<32x128xbf16>, vector<8x128xf32> -> vector<8x128xf32>
    %166 = arith.addf %163, %165 : vector<8x128xf32>
    %167 = vector.extract_strided_slice %166 {offsets = [0, 0], sizes = [8, 96], strides = [1, 1]} : vector<8x128xf32> to vector<8x96xf32>
    %168 = arith.negf %167 : vector<8x96xf32>
    %169 = math.exp %168 : vector<8x96xf32>
    %cst_74 = arith.constant 1.000000e+00 : f32
    %170 = vector.broadcast %cst_74 : f32 to vector<8x96xf32>
    %171 = arith.addf %170, %169 : vector<8x96xf32>
    %172 = arith.divf %170, %171 : vector<8x96xf32>
    %173 = vector.extract_strided_slice %172 {offsets = [0, 0], sizes = [8, 32], strides = [1, 1]} : vector<8x96xf32> to vector<8x32xf32>
    %174 = vector.extract_strided_slice %172 {offsets = [0, 32], sizes = [8, 32], strides = [1, 1]} : vector<8x96xf32> to vector<8x32xf32>
    %175 = vector.extract_strided_slice %172 {offsets = [0, 64], sizes = [8, 32], strides = [1, 1]} : vector<8x96xf32> to vector<8x32xf32>
    %176 = vector.extract_strided_slice %166 {offsets = [0, 96], sizes = [8, 32], strides = [1, 1]} : vector<8x128xf32> to vector<8x32xf32>
    %177 = math.tanh %176 : vector<8x32xf32>
    %178 = arith.mulf %174, %154 : vector<8x32xf32>
    %179 = arith.mulf %173, %177 : vector<8x32xf32>
    %180 = arith.addf %178, %179 : vector<8x32xf32>
    %181 = math.tanh %180 : vector<8x32xf32>
    %182 = arith.mulf %175, %181 : vector<8x32xf32>
    %183 = arith.index_cast %c4_i32 : i32 to index
    %c0_75 = arith.constant 0 : index
    %c0_76 = arith.constant 0 : index
    %184 = vector.load %arg11[%183, %c0_75, %c0_76] : memref<8x8x32xf32, #tpu.memory_space<vmem>>, vector<1x8x32xf32>
    %185 = vector.shape_cast %184 : vector<1x8x32xf32> to vector<8x32xf32>
    %186 = vector.shape_cast %182 : vector<8x32xf32> to vector<1x8x32xf32>
    tpu.vector_store %arg11[%183, %c0_75, %c0_76], %186 {strides = array<i32>} : memref<8x8x32xf32, #tpu.memory_space<vmem>>, vector<1x8x32xf32>,
    %c5_i32 = arith.constant 5 : i32
    %187 = arith.index_cast %c5_i32 : i32 to index
    %c0_77 = arith.constant 0 : index
    %c0_78 = arith.constant 0 : index
    %188 = vector.load %arg12[%187, %c0_77, %c0_78] : memref<8x8x128xf32, #tpu.memory_space<vmem>>, vector<1x8x128xf32>
    %189 = vector.shape_cast %188 : vector<1x8x128xf32> to vector<8x128xf32>
    %190 = arith.truncf %182 : vector<8x32xf32> to vector<8x32xbf16>
    %cst_79 = arith.constant dense<0.000000e+00> : vector<8x128xf32>
    %191 = tpu.matmul %190, %18, %cst_79 {dimension_numbers = #tpu.dot_dimension_numbers<[1], [0], [0], [1], [0, 0, 1, 1], [], []>} : vector<8x32xbf16>, vector<32x128xbf16>, vector<8x128xf32> -> vector<8x128xf32>
    %192 = arith.addf %189, %191 : vector<8x128xf32>
    %193 = vector.extract_strided_slice %192 {offsets = [0, 0], sizes = [8, 96], strides = [1, 1]} : vector<8x128xf32> to vector<8x96xf32>
    %194 = arith.negf %193 : vector<8x96xf32>
    %195 = math.exp %194 : vector<8x96xf32>
    %cst_80 = arith.constant 1.000000e+00 : f32
    %196 = vector.broadcast %cst_80 : f32 to vector<8x96xf32>
    %197 = arith.addf %196, %195 : vector<8x96xf32>
    %198 = arith.divf %196, %197 : vector<8x96xf32>
    %199 = vector.extract_strided_slice %198 {offsets = [0, 0], sizes = [8, 32], strides = [1, 1]} : vector<8x96xf32> to vector<8x32xf32>
    %200 = vector.extract_strided_slice %198 {offsets = [0, 32], sizes = [8, 32], strides = [1, 1]} : vector<8x96xf32> to vector<8x32xf32>
    %201 = vector.extract_strided_slice %198 {offsets = [0, 64], sizes = [8, 32], strides = [1, 1]} : vector<8x96xf32> to vector<8x32xf32>
    %202 = vector.extract_strided_slice %192 {offsets = [0, 96], sizes = [8, 32], strides = [1, 1]} : vector<8x128xf32> to vector<8x32xf32>
    %203 = math.tanh %202 : vector<8x32xf32>
    %204 = arith.mulf %200, %180 : vector<8x32xf32>
    %205 = arith.mulf %199, %203 : vector<8x32xf32>
    %206 = arith.addf %204, %205 : vector<8x32xf32>
    %207 = math.tanh %206 : vector<8x32xf32>
    %208 = arith.mulf %201, %207 : vector<8x32xf32>
    %209 = arith.index_cast %c5_i32 : i32 to index
    %c0_81 = arith.constant 0 : index
    %c0_82 = arith.constant 0 : index
    %210 = vector.load %arg11[%209, %c0_81, %c0_82] : memref<8x8x32xf32, #tpu.memory_space<vmem>>, vector<1x8x32xf32>
    %211 = vector.shape_cast %210 : vector<1x8x32xf32> to vector<8x32xf32>
    %212 = vector.shape_cast %208 : vector<8x32xf32> to vector<1x8x32xf32>
    tpu.vector_store %arg11[%209, %c0_81, %c0_82], %212 {strides = array<i32>} : memref<8x8x32xf32, #tpu.memory_space<vmem>>, vector<1x8x32xf32>,
    %c6_i32 = arith.constant 6 : i32
    %213 = arith.index_cast %c6_i32 : i32 to index
    %c0_83 = arith.constant 0 : index
    %c0_84 = arith.constant 0 : index
    %214 = vector.load %arg12[%213, %c0_83, %c0_84] : memref<8x8x128xf32, #tpu.memory_space<vmem>>, vector<1x8x128xf32>
    %215 = vector.shape_cast %214 : vector<1x8x128xf32> to vector<8x128xf32>
    %216 = arith.truncf %208 : vector<8x32xf32> to vector<8x32xbf16>
    %cst_85 = arith.constant dense<0.000000e+00> : vector<8x128xf32>
    %217 = tpu.matmul %216, %18, %cst_85 {dimension_numbers = #tpu.dot_dimension_numbers<[1], [0], [0], [1], [0, 0, 1, 1], [], []>} : vector<8x32xbf16>, vector<32x128xbf16>, vector<8x128xf32> -> vector<8x128xf32>
    %218 = arith.addf %215, %217 : vector<8x128xf32>
    %219 = vector.extract_strided_slice %218 {offsets = [0, 0], sizes = [8, 96], strides = [1, 1]} : vector<8x128xf32> to vector<8x96xf32>
    %220 = arith.negf %219 : vector<8x96xf32>
    %221 = math.exp %220 : vector<8x96xf32>
    %cst_86 = arith.constant 1.000000e+00 : f32
    %222 = vector.broadcast %cst_86 : f32 to vector<8x96xf32>
    %223 = arith.addf %222, %221 : vector<8x96xf32>
    %224 = arith.divf %222, %223 : vector<8x96xf32>
    %225 = vector.extract_strided_slice %224 {offsets = [0, 0], sizes = [8, 32], strides = [1, 1]} : vector<8x96xf32> to vector<8x32xf32>
    %226 = vector.extract_strided_slice %224 {offsets = [0, 32], sizes = [8, 32], strides = [1, 1]} : vector<8x96xf32> to vector<8x32xf32>
    %227 = vector.extract_strided_slice %224 {offsets = [0, 64], sizes = [8, 32], strides = [1, 1]} : vector<8x96xf32> to vector<8x32xf32>
    %228 = vector.extract_strided_slice %218 {offsets = [0, 96], sizes = [8, 32], strides = [1, 1]} : vector<8x128xf32> to vector<8x32xf32>
    %229 = math.tanh %228 : vector<8x32xf32>
    %230 = arith.mulf %226, %206 : vector<8x32xf32>
    %231 = arith.mulf %225, %229 : vector<8x32xf32>
    %232 = arith.addf %230, %231 : vector<8x32xf32>
    %233 = math.tanh %232 : vector<8x32xf32>
    %234 = arith.mulf %227, %233 : vector<8x32xf32>
    %235 = arith.index_cast %c6_i32 : i32 to index
    %c0_87 = arith.constant 0 : index
    %c0_88 = arith.constant 0 : index
    %236 = vector.load %arg11[%235, %c0_87, %c0_88] : memref<8x8x32xf32, #tpu.memory_space<vmem>>, vector<1x8x32xf32>
    %237 = vector.shape_cast %236 : vector<1x8x32xf32> to vector<8x32xf32>
    %238 = vector.shape_cast %234 : vector<8x32xf32> to vector<1x8x32xf32>
    tpu.vector_store %arg11[%235, %c0_87, %c0_88], %238 {strides = array<i32>} : memref<8x8x32xf32, #tpu.memory_space<vmem>>, vector<1x8x32xf32>,
    %c7_i32 = arith.constant 7 : i32
    %239 = arith.index_cast %c7_i32 : i32 to index
    %c0_89 = arith.constant 0 : index
    %c0_90 = arith.constant 0 : index
    %240 = vector.load %arg12[%239, %c0_89, %c0_90] : memref<8x8x128xf32, #tpu.memory_space<vmem>>, vector<1x8x128xf32>
    %241 = vector.shape_cast %240 : vector<1x8x128xf32> to vector<8x128xf32>
    %242 = arith.truncf %234 : vector<8x32xf32> to vector<8x32xbf16>
    %cst_91 = arith.constant dense<0.000000e+00> : vector<8x128xf32>
    %243 = tpu.matmul %242, %18, %cst_91 {dimension_numbers = #tpu.dot_dimension_numbers<[1], [0], [0], [1], [0, 0, 1, 1], [], []>} : vector<8x32xbf16>, vector<32x128xbf16>, vector<8x128xf32> -> vector<8x128xf32>
    %244 = arith.addf %241, %243 : vector<8x128xf32>
    %245 = vector.extract_strided_slice %244 {offsets = [0, 0], sizes = [8, 96], strides = [1, 1]} : vector<8x128xf32> to vector<8x96xf32>
    %246 = arith.negf %245 : vector<8x96xf32>
    %247 = math.exp %246 : vector<8x96xf32>
    %cst_92 = arith.constant 1.000000e+00 : f32
    %248 = vector.broadcast %cst_92 : f32 to vector<8x96xf32>
    %249 = arith.addf %248, %247 : vector<8x96xf32>
    %250 = arith.divf %248, %249 : vector<8x96xf32>
    %251 = vector.extract_strided_slice %250 {offsets = [0, 0], sizes = [8, 32], strides = [1, 1]} : vector<8x96xf32> to vector<8x32xf32>
    %252 = vector.extract_strided_slice %250 {offsets = [0, 32], sizes = [8, 32], strides = [1, 1]} : vector<8x96xf32> to vector<8x32xf32>
    %253 = vector.extract_strided_slice %250 {offsets = [0, 64], sizes = [8, 32], strides = [1, 1]} : vector<8x96xf32> to vector<8x32xf32>
    %254 = vector.extract_strided_slice %244 {offsets = [0, 96], sizes = [8, 32], strides = [1, 1]} : vector<8x128xf32> to vector<8x32xf32>
    %255 = math.tanh %254 : vector<8x32xf32>
    %256 = arith.mulf %252, %232 : vector<8x32xf32>
    %257 = arith.mulf %251, %255 : vector<8x32xf32>
    %258 = arith.addf %256, %257 : vector<8x32xf32>
    %259 = math.tanh %258 : vector<8x32xf32>
    %260 = arith.mulf %253, %259 : vector<8x32xf32>
    %261 = arith.index_cast %c7_i32 : i32 to index
    %c0_93 = arith.constant 0 : index
    %c0_94 = arith.constant 0 : index
    %262 = vector.load %arg11[%261, %c0_93, %c0_94] : memref<8x8x32xf32, #tpu.memory_space<vmem>>, vector<1x8x32xf32>
    %263 = vector.shape_cast %262 : vector<1x8x32xf32> to vector<8x32xf32>
    %264 = vector.shape_cast %260 : vector<8x32xf32> to vector<1x8x32xf32>
    tpu.vector_store %arg11[%261, %c0_93, %c0_94], %264 {strides = array<i32>} : memref<8x8x32xf32, #tpu.memory_space<vmem>>, vector<1x8x32xf32>,
    %c8_i32 = arith.constant 8 : i32
    %c0_95 = arith.constant 0 : index
    %c0_96 = arith.constant 0 : index
    %c0_97 = arith.constant 0 : index
    %265 = vector.load %arg11[%c0_95, %c0_96, %c0_97] : memref<8x8x32xf32, #tpu.memory_space<vmem>>, vector<1x8x32xf32>
    %266 = vector.shape_cast %265 : vector<1x8x32xf32> to vector<8x32xf32>
    %c1_98 = arith.constant 1 : index
    %c0_99 = arith.constant 0 : index
    %c0_100 = arith.constant 0 : index
    %267 = vector.load %arg11[%c1_98, %c0_99, %c0_100] : memref<8x8x32xf32, #tpu.memory_space<vmem>>, vector<1x8x32xf32>
    %268 = vector.shape_cast %267 : vector<1x8x32xf32> to vector<8x32xf32>
    %c2_101 = arith.constant 2 : index
    %c0_102 = arith.constant 0 : index
    %c0_103 = arith.constant 0 : index
    %269 = vector.load %arg11[%c2_101, %c0_102, %c0_103] : memref<8x8x32xf32, #tpu.memory_space<vmem>>, vector<1x8x32xf32>
    %270 = vector.shape_cast %269 : vector<1x8x32xf32> to vector<8x32xf32>
    %c3_104 = arith.constant 3 : index
    %c0_105 = arith.constant 0 : index
    %c0_106 = arith.constant 0 : index
    %271 = vector.load %arg11[%c3_104, %c0_105, %c0_106] : memref<8x8x32xf32, #tpu.memory_space<vmem>>, vector<1x8x32xf32>
    %272 = vector.shape_cast %271 : vector<1x8x32xf32> to vector<8x32xf32>
    %c4_107 = arith.constant 4 : index
    %c0_108 = arith.constant 0 : index
    %c0_109 = arith.constant 0 : index
    %273 = vector.load %arg11[%c4_107, %c0_108, %c0_109] : memref<8x8x32xf32, #tpu.memory_space<vmem>>, vector<1x8x32xf32>
    %274 = vector.shape_cast %273 : vector<1x8x32xf32> to vector<8x32xf32>
    %c5_110 = arith.constant 5 : index
    %c0_111 = arith.constant 0 : index
    %c0_112 = arith.constant 0 : index
    %275 = vector.load %arg11[%c5_110, %c0_111, %c0_112] : memref<8x8x32xf32, #tpu.memory_space<vmem>>, vector<1x8x32xf32>
    %276 = vector.shape_cast %275 : vector<1x8x32xf32> to vector<8x32xf32>
    %c6_113 = arith.constant 6 : index
    %c0_114 = arith.constant 0 : index
    %c0_115 = arith.constant 0 : index
    %277 = vector.load %arg11[%c6_113, %c0_114, %c0_115] : memref<8x8x32xf32, #tpu.memory_space<vmem>>, vector<1x8x32xf32>
    %278 = vector.shape_cast %277 : vector<1x8x32xf32> to vector<8x32xf32>
    %c7_116 = arith.constant 7 : index
    %c0_117 = arith.constant 0 : index
    %c0_118 = arith.constant 0 : index
    %279 = vector.load %arg11[%c7_116, %c0_117, %c0_118] : memref<8x8x32xf32, #tpu.memory_space<vmem>>, vector<1x8x32xf32>
    %280 = vector.shape_cast %279 : vector<1x8x32xf32> to vector<8x32xf32>
    %281 = tpu.concatenate %266, %268, %270, %272, %274, %276, %278, %280 in 0 : vector<8x32xf32>, vector<8x32xf32>, vector<8x32xf32>, vector<8x32xf32>, vector<8x32xf32>, vector<8x32xf32>, vector<8x32xf32>, vector<8x32xf32> -> vector<64x32xf32>
    %c0_119 = arith.constant 0 : index
    %c0_120 = arith.constant 0 : index
    %282 = vector.load %arg5[%c0_119, %c0_120] : memref<32x128xbf16, #tpu.memory_space<vmem>>, vector<32x128xbf16>
    %c0_121 = arith.constant 0 : index
    %c0_122 = arith.constant 0 : index
    %283 = vector.load %arg6[%c0_121, %c0_122] : memref<32x128xbf16, #tpu.memory_space<vmem>>, vector<32x128xbf16>
    %c0_123 = arith.constant 0 : index
    %c0_124 = arith.constant 0 : index
    %284 = vector.load %arg7[%c0_123, %c0_124] : memref<1x128xf32, #tpu.memory_space<vmem>>, vector<1x128xf32>
    %285 = arith.truncf %281 : vector<64x32xf32> to vector<64x32xbf16>
    %cst_125 = arith.constant dense<0.000000e+00> : vector<64x128xf32>
    %286 = tpu.matmul %285, %282, %cst_125 {dimension_numbers = #tpu.dot_dimension_numbers<[1], [0], [0], [1], [0, 0, 1, 1], [], []>} : vector<64x32xbf16>, vector<32x128xbf16>, vector<64x128xf32> -> vector<64x128xf32>
    %287 = vector.broadcast %284 : vector<1x128xf32> to vector<64x128xf32>
    %288 = arith.addf %286, %287 : vector<64x128xf32>
    %289 = vector.extract_strided_slice %288 {offsets = [0, 0], sizes = [8, 128], strides = [1, 1]} : vector<64x128xf32> to vector<8x128xf32>
    %c0_126 = arith.constant 0 : index
    %c0_127 = arith.constant 0 : index
    %c0_128 = arith.constant 0 : index
    %290 = vector.load %arg12[%c0_126, %c0_127, %c0_128] : memref<8x8x128xf32, #tpu.memory_space<vmem>>, vector<1x8x128xf32>
    %291 = vector.shape_cast %290 : vector<1x8x128xf32> to vector<8x128xf32>
    %292 = vector.shape_cast %289 : vector<8x128xf32> to vector<1x8x128xf32>
    tpu.vector_store %arg12[%c0_126, %c0_127, %c0_128], %292 {strides = array<i32>} : memref<8x8x128xf32, #tpu.memory_space<vmem>>, vector<1x8x128xf32>,
    %293 = vector.extract_strided_slice %288 {offsets = [8, 0], sizes = [8, 128], strides = [1, 1]} : vector<64x128xf32> to vector<8x128xf32>
    %c1_129 = arith.constant 1 : index
    %c0_130 = arith.constant 0 : index
    %c0_131 = arith.constant 0 : index
    %294 = vector.load %arg12[%c1_129, %c0_130, %c0_131] : memref<8x8x128xf32, #tpu.memory_space<vmem>>, vector<1x8x128xf32>
    %295 = vector.shape_cast %294 : vector<1x8x128xf32> to vector<8x128xf32>
    %296 = vector.shape_cast %293 : vector<8x128xf32> to vector<1x8x128xf32>
    tpu.vector_store %arg12[%c1_129, %c0_130, %c0_131], %296 {strides = array<i32>} : memref<8x8x128xf32, #tpu.memory_space<vmem>>, vector<1x8x128xf32>,
    %297 = vector.extract_strided_slice %288 {offsets = [16, 0], sizes = [8, 128], strides = [1, 1]} : vector<64x128xf32> to vector<8x128xf32>
    %c2_132 = arith.constant 2 : index
    %c0_133 = arith.constant 0 : index
    %c0_134 = arith.constant 0 : index
    %298 = vector.load %arg12[%c2_132, %c0_133, %c0_134] : memref<8x8x128xf32, #tpu.memory_space<vmem>>, vector<1x8x128xf32>
    %299 = vector.shape_cast %298 : vector<1x8x128xf32> to vector<8x128xf32>
    %300 = vector.shape_cast %297 : vector<8x128xf32> to vector<1x8x128xf32>
    tpu.vector_store %arg12[%c2_132, %c0_133, %c0_134], %300 {strides = array<i32>} : memref<8x8x128xf32, #tpu.memory_space<vmem>>, vector<1x8x128xf32>,
    %301 = vector.extract_strided_slice %288 {offsets = [24, 0], sizes = [8, 128], strides = [1, 1]} : vector<64x128xf32> to vector<8x128xf32>
    %c3_135 = arith.constant 3 : index
    %c0_136 = arith.constant 0 : index
    %c0_137 = arith.constant 0 : index
    %302 = vector.load %arg12[%c3_135, %c0_136, %c0_137] : memref<8x8x128xf32, #tpu.memory_space<vmem>>, vector<1x8x128xf32>
    %303 = vector.shape_cast %302 : vector<1x8x128xf32> to vector<8x128xf32>
    %304 = vector.shape_cast %301 : vector<8x128xf32> to vector<1x8x128xf32>
    tpu.vector_store %arg12[%c3_135, %c0_136, %c0_137], %304 {strides = array<i32>} : memref<8x8x128xf32, #tpu.memory_space<vmem>>, vector<1x8x128xf32>,
    %305 = vector.extract_strided_slice %288 {offsets = [32, 0], sizes = [8, 128], strides = [1, 1]} : vector<64x128xf32> to vector<8x128xf32>
    %c4_138 = arith.constant 4 : index
    %c0_139 = arith.constant 0 : index
    %c0_140 = arith.constant 0 : index
    %306 = vector.load %arg12[%c4_138, %c0_139, %c0_140] : memref<8x8x128xf32, #tpu.memory_space<vmem>>, vector<1x8x128xf32>
    %307 = vector.shape_cast %306 : vector<1x8x128xf32> to vector<8x128xf32>
    %308 = vector.shape_cast %305 : vector<8x128xf32> to vector<1x8x128xf32>
    tpu.vector_store %arg12[%c4_138, %c0_139, %c0_140], %308 {strides = array<i32>} : memref<8x8x128xf32, #tpu.memory_space<vmem>>, vector<1x8x128xf32>,
    %309 = vector.extract_strided_slice %288 {offsets = [40, 0], sizes = [8, 128], strides = [1, 1]} : vector<64x128xf32> to vector<8x128xf32>
    %c5_141 = arith.constant 5 : index
    %c0_142 = arith.constant 0 : index
    %c0_143 = arith.constant 0 : index
    %310 = vector.load %arg12[%c5_141, %c0_142, %c0_143] : memref<8x8x128xf32, #tpu.memory_space<vmem>>, vector<1x8x128xf32>
    %311 = vector.shape_cast %310 : vector<1x8x128xf32> to vector<8x128xf32>
    %312 = vector.shape_cast %309 : vector<8x128xf32> to vector<1x8x128xf32>
    tpu.vector_store %arg12[%c5_141, %c0_142, %c0_143], %312 {strides = array<i32>} : memref<8x8x128xf32, #tpu.memory_space<vmem>>, vector<1x8x128xf32>,
    %313 = vector.extract_strided_slice %288 {offsets = [48, 0], sizes = [8, 128], strides = [1, 1]} : vector<64x128xf32> to vector<8x128xf32>
    %c6_144 = arith.constant 6 : index
    %c0_145 = arith.constant 0 : index
    %c0_146 = arith.constant 0 : index
    %314 = vector.load %arg12[%c6_144, %c0_145, %c0_146] : memref<8x8x128xf32, #tpu.memory_space<vmem>>, vector<1x8x128xf32>
    %315 = vector.shape_cast %314 : vector<1x8x128xf32> to vector<8x128xf32>
    %316 = vector.shape_cast %313 : vector<8x128xf32> to vector<1x8x128xf32>
    tpu.vector_store %arg12[%c6_144, %c0_145, %c0_146], %316 {strides = array<i32>} : memref<8x8x128xf32, #tpu.memory_space<vmem>>, vector<1x8x128xf32>,
    %317 = vector.extract_strided_slice %288 {offsets = [56, 0], sizes = [8, 128], strides = [1, 1]} : vector<64x128xf32> to vector<8x128xf32>
    %c7_147 = arith.constant 7 : index
    %c0_148 = arith.constant 0 : index
    %c0_149 = arith.constant 0 : index
    %318 = vector.load %arg12[%c7_147, %c0_148, %c0_149] : memref<8x8x128xf32, #tpu.memory_space<vmem>>, vector<1x8x128xf32>
    %319 = vector.shape_cast %318 : vector<1x8x128xf32> to vector<8x128xf32>
    %320 = vector.shape_cast %317 : vector<8x128xf32> to vector<1x8x128xf32>
    tpu.vector_store %arg12[%c7_147, %c0_148, %c0_149], %320 {strides = array<i32>} : memref<8x8x128xf32, #tpu.memory_space<vmem>>, vector<1x8x128xf32>,
    %cst_150 = arith.constant 0.000000e+00 : f32
    %321 = vector.broadcast %cst_150 : f32 to vector<8x32xf32>
    %c0_i32_151 = arith.constant 0 : i32
    %322 = arith.index_cast %c0_i32_151 : i32 to index
    %c0_152 = arith.constant 0 : index
    %c0_153 = arith.constant 0 : index
    %323 = vector.load %arg12[%322, %c0_152, %c0_153] : memref<8x8x128xf32, #tpu.memory_space<vmem>>, vector<1x8x128xf32>
    %324 = vector.shape_cast %323 : vector<1x8x128xf32> to vector<8x128xf32>
    %325 = arith.truncf %321 : vector<8x32xf32> to vector<8x32xbf16>
    %cst_154 = arith.constant dense<0.000000e+00> : vector<8x128xf32>
    %326 = tpu.matmul %325, %283, %cst_154 {dimension_numbers = #tpu.dot_dimension_numbers<[1], [0], [0], [1], [0, 0, 1, 1], [], []>} : vector<8x32xbf16>, vector<32x128xbf16>, vector<8x128xf32> -> vector<8x128xf32>
    %327 = arith.addf %324, %326 : vector<8x128xf32>
    %328 = vector.extract_strided_slice %327 {offsets = [0, 0], sizes = [8, 96], strides = [1, 1]} : vector<8x128xf32> to vector<8x96xf32>
    %329 = arith.negf %328 : vector<8x96xf32>
    %330 = math.exp %329 : vector<8x96xf32>
    %cst_155 = arith.constant 1.000000e+00 : f32
    %331 = vector.broadcast %cst_155 : f32 to vector<8x96xf32>
    %332 = arith.addf %331, %330 : vector<8x96xf32>
    %333 = arith.divf %331, %332 : vector<8x96xf32>
    %334 = vector.extract_strided_slice %333 {offsets = [0, 0], sizes = [8, 32], strides = [1, 1]} : vector<8x96xf32> to vector<8x32xf32>
    %335 = vector.extract_strided_slice %333 {offsets = [0, 32], sizes = [8, 32], strides = [1, 1]} : vector<8x96xf32> to vector<8x32xf32>
    %336 = vector.extract_strided_slice %333 {offsets = [0, 64], sizes = [8, 32], strides = [1, 1]} : vector<8x96xf32> to vector<8x32xf32>
    %337 = vector.extract_strided_slice %327 {offsets = [0, 96], sizes = [8, 32], strides = [1, 1]} : vector<8x128xf32> to vector<8x32xf32>
    %338 = math.tanh %337 : vector<8x32xf32>
    %339 = arith.mulf %335, %321 : vector<8x32xf32>
    %340 = arith.mulf %334, %338 : vector<8x32xf32>
    %341 = arith.addf %339, %340 : vector<8x32xf32>
    %342 = math.tanh %341 : vector<8x32xf32>
    %343 = arith.mulf %336, %342 : vector<8x32xf32>
    %344 = arith.index_cast %c0_i32_151 : i32 to index
    %c0_156 = arith.constant 0 : index
    %c0_157 = arith.constant 0 : index
    %345 = vector.load %arg11[%344, %c0_156, %c0_157] : memref<8x8x32xf32, #tpu.memory_space<vmem>>, vector<1x8x32xf32>
    %346 = vector.shape_cast %345 : vector<1x8x32xf32> to vector<8x32xf32>
    %347 = vector.shape_cast %343 : vector<8x32xf32> to vector<1x8x32xf32>
    tpu.vector_store %arg11[%344, %c0_156, %c0_157], %347 {strides = array<i32>} : memref<8x8x32xf32, #tpu.memory_space<vmem>>, vector<1x8x32xf32>,
    %c1_i32_158 = arith.constant 1 : i32
    %348 = arith.index_cast %c1_i32_158 : i32 to index
    %c0_159 = arith.constant 0 : index
    %c0_160 = arith.constant 0 : index
    %349 = vector.load %arg12[%348, %c0_159, %c0_160] : memref<8x8x128xf32, #tpu.memory_space<vmem>>, vector<1x8x128xf32>
    %350 = vector.shape_cast %349 : vector<1x8x128xf32> to vector<8x128xf32>
    %351 = arith.truncf %343 : vector<8x32xf32> to vector<8x32xbf16>
    %cst_161 = arith.constant dense<0.000000e+00> : vector<8x128xf32>
    %352 = tpu.matmul %351, %283, %cst_161 {dimension_numbers = #tpu.dot_dimension_numbers<[1], [0], [0], [1], [0, 0, 1, 1], [], []>} : vector<8x32xbf16>, vector<32x128xbf16>, vector<8x128xf32> -> vector<8x128xf32>
    %353 = arith.addf %350, %352 : vector<8x128xf32>
    %354 = vector.extract_strided_slice %353 {offsets = [0, 0], sizes = [8, 96], strides = [1, 1]} : vector<8x128xf32> to vector<8x96xf32>
    %355 = arith.negf %354 : vector<8x96xf32>
    %356 = math.exp %355 : vector<8x96xf32>
    %cst_162 = arith.constant 1.000000e+00 : f32
    %357 = vector.broadcast %cst_162 : f32 to vector<8x96xf32>
    %358 = arith.addf %357, %356 : vector<8x96xf32>
    %359 = arith.divf %357, %358 : vector<8x96xf32>
    %360 = vector.extract_strided_slice %359 {offsets = [0, 0], sizes = [8, 32], strides = [1, 1]} : vector<8x96xf32> to vector<8x32xf32>
    %361 = vector.extract_strided_slice %359 {offsets = [0, 32], sizes = [8, 32], strides = [1, 1]} : vector<8x96xf32> to vector<8x32xf32>
    %362 = vector.extract_strided_slice %359 {offsets = [0, 64], sizes = [8, 32], strides = [1, 1]} : vector<8x96xf32> to vector<8x32xf32>
    %363 = vector.extract_strided_slice %353 {offsets = [0, 96], sizes = [8, 32], strides = [1, 1]} : vector<8x128xf32> to vector<8x32xf32>
    %364 = math.tanh %363 : vector<8x32xf32>
    %365 = arith.mulf %361, %341 : vector<8x32xf32>
    %366 = arith.mulf %360, %364 : vector<8x32xf32>
    %367 = arith.addf %365, %366 : vector<8x32xf32>
    %368 = math.tanh %367 : vector<8x32xf32>
    %369 = arith.mulf %362, %368 : vector<8x32xf32>
    %370 = arith.index_cast %c1_i32_158 : i32 to index
    %c0_163 = arith.constant 0 : index
    %c0_164 = arith.constant 0 : index
    %371 = vector.load %arg11[%370, %c0_163, %c0_164] : memref<8x8x32xf32, #tpu.memory_space<vmem>>, vector<1x8x32xf32>
    %372 = vector.shape_cast %371 : vector<1x8x32xf32> to vector<8x32xf32>
    %373 = vector.shape_cast %369 : vector<8x32xf32> to vector<1x8x32xf32>
    tpu.vector_store %arg11[%370, %c0_163, %c0_164], %373 {strides = array<i32>} : memref<8x8x32xf32, #tpu.memory_space<vmem>>, vector<1x8x32xf32>,
    %c2_i32_165 = arith.constant 2 : i32
    %374 = arith.index_cast %c2_i32_165 : i32 to index
    %c0_166 = arith.constant 0 : index
    %c0_167 = arith.constant 0 : index
    %375 = vector.load %arg12[%374, %c0_166, %c0_167] : memref<8x8x128xf32, #tpu.memory_space<vmem>>, vector<1x8x128xf32>
    %376 = vector.shape_cast %375 : vector<1x8x128xf32> to vector<8x128xf32>
    %377 = arith.truncf %369 : vector<8x32xf32> to vector<8x32xbf16>
    %cst_168 = arith.constant dense<0.000000e+00> : vector<8x128xf32>
    %378 = tpu.matmul %377, %283, %cst_168 {dimension_numbers = #tpu.dot_dimension_numbers<[1], [0], [0], [1], [0, 0, 1, 1], [], []>} : vector<8x32xbf16>, vector<32x128xbf16>, vector<8x128xf32> -> vector<8x128xf32>
    %379 = arith.addf %376, %378 : vector<8x128xf32>
    %380 = vector.extract_strided_slice %379 {offsets = [0, 0], sizes = [8, 96], strides = [1, 1]} : vector<8x128xf32> to vector<8x96xf32>
    %381 = arith.negf %380 : vector<8x96xf32>
    %382 = math.exp %381 : vector<8x96xf32>
    %cst_169 = arith.constant 1.000000e+00 : f32
    %383 = vector.broadcast %cst_169 : f32 to vector<8x96xf32>
    %384 = arith.addf %383, %382 : vector<8x96xf32>
    %385 = arith.divf %383, %384 : vector<8x96xf32>
    %386 = vector.extract_strided_slice %385 {offsets = [0, 0], sizes = [8, 32], strides = [1, 1]} : vector<8x96xf32> to vector<8x32xf32>
    %387 = vector.extract_strided_slice %385 {offsets = [0, 32], sizes = [8, 32], strides = [1, 1]} : vector<8x96xf32> to vector<8x32xf32>
    %388 = vector.extract_strided_slice %385 {offsets = [0, 64], sizes = [8, 32], strides = [1, 1]} : vector<8x96xf32> to vector<8x32xf32>
    %389 = vector.extract_strided_slice %379 {offsets = [0, 96], sizes = [8, 32], strides = [1, 1]} : vector<8x128xf32> to vector<8x32xf32>
    %390 = math.tanh %389 : vector<8x32xf32>
    %391 = arith.mulf %387, %367 : vector<8x32xf32>
    %392 = arith.mulf %386, %390 : vector<8x32xf32>
    %393 = arith.addf %391, %392 : vector<8x32xf32>
    %394 = math.tanh %393 : vector<8x32xf32>
    %395 = arith.mulf %388, %394 : vector<8x32xf32>
    %396 = arith.index_cast %c2_i32_165 : i32 to index
    %c0_170 = arith.constant 0 : index
    %c0_171 = arith.constant 0 : index
    %397 = vector.load %arg11[%396, %c0_170, %c0_171] : memref<8x8x32xf32, #tpu.memory_space<vmem>>, vector<1x8x32xf32>
    %398 = vector.shape_cast %397 : vector<1x8x32xf32> to vector<8x32xf32>
    %399 = vector.shape_cast %395 : vector<8x32xf32> to vector<1x8x32xf32>
    tpu.vector_store %arg11[%396, %c0_170, %c0_171], %399 {strides = array<i32>} : memref<8x8x32xf32, #tpu.memory_space<vmem>>, vector<1x8x32xf32>,
    %c3_i32_172 = arith.constant 3 : i32
    %400 = arith.index_cast %c3_i32_172 : i32 to index
    %c0_173 = arith.constant 0 : index
    %c0_174 = arith.constant 0 : index
    %401 = vector.load %arg12[%400, %c0_173, %c0_174] : memref<8x8x128xf32, #tpu.memory_space<vmem>>, vector<1x8x128xf32>
    %402 = vector.shape_cast %401 : vector<1x8x128xf32> to vector<8x128xf32>
    %403 = arith.truncf %395 : vector<8x32xf32> to vector<8x32xbf16>
    %cst_175 = arith.constant dense<0.000000e+00> : vector<8x128xf32>
    %404 = tpu.matmul %403, %283, %cst_175 {dimension_numbers = #tpu.dot_dimension_numbers<[1], [0], [0], [1], [0, 0, 1, 1], [], []>} : vector<8x32xbf16>, vector<32x128xbf16>, vector<8x128xf32> -> vector<8x128xf32>
    %405 = arith.addf %402, %404 : vector<8x128xf32>
    %406 = vector.extract_strided_slice %405 {offsets = [0, 0], sizes = [8, 96], strides = [1, 1]} : vector<8x128xf32> to vector<8x96xf32>
    %407 = arith.negf %406 : vector<8x96xf32>
    %408 = math.exp %407 : vector<8x96xf32>
    %cst_176 = arith.constant 1.000000e+00 : f32
    %409 = vector.broadcast %cst_176 : f32 to vector<8x96xf32>
    %410 = arith.addf %409, %408 : vector<8x96xf32>
    %411 = arith.divf %409, %410 : vector<8x96xf32>
    %412 = vector.extract_strided_slice %411 {offsets = [0, 0], sizes = [8, 32], strides = [1, 1]} : vector<8x96xf32> to vector<8x32xf32>
    %413 = vector.extract_strided_slice %411 {offsets = [0, 32], sizes = [8, 32], strides = [1, 1]} : vector<8x96xf32> to vector<8x32xf32>
    %414 = vector.extract_strided_slice %411 {offsets = [0, 64], sizes = [8, 32], strides = [1, 1]} : vector<8x96xf32> to vector<8x32xf32>
    %415 = vector.extract_strided_slice %405 {offsets = [0, 96], sizes = [8, 32], strides = [1, 1]} : vector<8x128xf32> to vector<8x32xf32>
    %416 = math.tanh %415 : vector<8x32xf32>
    %417 = arith.mulf %413, %393 : vector<8x32xf32>
    %418 = arith.mulf %412, %416 : vector<8x32xf32>
    %419 = arith.addf %417, %418 : vector<8x32xf32>
    %420 = math.tanh %419 : vector<8x32xf32>
    %421 = arith.mulf %414, %420 : vector<8x32xf32>
    %422 = arith.index_cast %c3_i32_172 : i32 to index
    %c0_177 = arith.constant 0 : index
    %c0_178 = arith.constant 0 : index
    %423 = vector.load %arg11[%422, %c0_177, %c0_178] : memref<8x8x32xf32, #tpu.memory_space<vmem>>, vector<1x8x32xf32>
    %424 = vector.shape_cast %423 : vector<1x8x32xf32> to vector<8x32xf32>
    %425 = vector.shape_cast %421 : vector<8x32xf32> to vector<1x8x32xf32>
    tpu.vector_store %arg11[%422, %c0_177, %c0_178], %425 {strides = array<i32>} : memref<8x8x32xf32, #tpu.memory_space<vmem>>, vector<1x8x32xf32>,
    %c4_i32_179 = arith.constant 4 : i32
    %426 = arith.index_cast %c4_i32_179 : i32 to index
    %c0_180 = arith.constant 0 : index
    %c0_181 = arith.constant 0 : index
    %427 = vector.load %arg12[%426, %c0_180, %c0_181] : memref<8x8x128xf32, #tpu.memory_space<vmem>>, vector<1x8x128xf32>
    %428 = vector.shape_cast %427 : vector<1x8x128xf32> to vector<8x128xf32>
    %429 = arith.truncf %421 : vector<8x32xf32> to vector<8x32xbf16>
    %cst_182 = arith.constant dense<0.000000e+00> : vector<8x128xf32>
    %430 = tpu.matmul %429, %283, %cst_182 {dimension_numbers = #tpu.dot_dimension_numbers<[1], [0], [0], [1], [0, 0, 1, 1], [], []>} : vector<8x32xbf16>, vector<32x128xbf16>, vector<8x128xf32> -> vector<8x128xf32>
    %431 = arith.addf %428, %430 : vector<8x128xf32>
    %432 = vector.extract_strided_slice %431 {offsets = [0, 0], sizes = [8, 96], strides = [1, 1]} : vector<8x128xf32> to vector<8x96xf32>
    %433 = arith.negf %432 : vector<8x96xf32>
    %434 = math.exp %433 : vector<8x96xf32>
    %cst_183 = arith.constant 1.000000e+00 : f32
    %435 = vector.broadcast %cst_183 : f32 to vector<8x96xf32>
    %436 = arith.addf %435, %434 : vector<8x96xf32>
    %437 = arith.divf %435, %436 : vector<8x96xf32>
    %438 = vector.extract_strided_slice %437 {offsets = [0, 0], sizes = [8, 32], strides = [1, 1]} : vector<8x96xf32> to vector<8x32xf32>
    %439 = vector.extract_strided_slice %437 {offsets = [0, 32], sizes = [8, 32], strides = [1, 1]} : vector<8x96xf32> to vector<8x32xf32>
    %440 = vector.extract_strided_slice %437 {offsets = [0, 64], sizes = [8, 32], strides = [1, 1]} : vector<8x96xf32> to vector<8x32xf32>
    %441 = vector.extract_strided_slice %431 {offsets = [0, 96], sizes = [8, 32], strides = [1, 1]} : vector<8x128xf32> to vector<8x32xf32>
    %442 = math.tanh %441 : vector<8x32xf32>
    %443 = arith.mulf %439, %419 : vector<8x32xf32>
    %444 = arith.mulf %438, %442 : vector<8x32xf32>
    %445 = arith.addf %443, %444 : vector<8x32xf32>
    %446 = math.tanh %445 : vector<8x32xf32>
    %447 = arith.mulf %440, %446 : vector<8x32xf32>
    %448 = arith.index_cast %c4_i32_179 : i32 to index
    %c0_184 = arith.constant 0 : index
    %c0_185 = arith.constant 0 : index
    %449 = vector.load %arg11[%448, %c0_184, %c0_185] : memref<8x8x32xf32, #tpu.memory_space<vmem>>, vector<1x8x32xf32>
    %450 = vector.shape_cast %449 : vector<1x8x32xf32> to vector<8x32xf32>
    %451 = vector.shape_cast %447 : vector<8x32xf32> to vector<1x8x32xf32>
    tpu.vector_store %arg11[%448, %c0_184, %c0_185], %451 {strides = array<i32>} : memref<8x8x32xf32, #tpu.memory_space<vmem>>, vector<1x8x32xf32>,
    %c5_i32_186 = arith.constant 5 : i32
    %452 = arith.index_cast %c5_i32_186 : i32 to index
    %c0_187 = arith.constant 0 : index
    %c0_188 = arith.constant 0 : index
    %453 = vector.load %arg12[%452, %c0_187, %c0_188] : memref<8x8x128xf32, #tpu.memory_space<vmem>>, vector<1x8x128xf32>
    %454 = vector.shape_cast %453 : vector<1x8x128xf32> to vector<8x128xf32>
    %455 = arith.truncf %447 : vector<8x32xf32> to vector<8x32xbf16>
    %cst_189 = arith.constant dense<0.000000e+00> : vector<8x128xf32>
    %456 = tpu.matmul %455, %283, %cst_189 {dimension_numbers = #tpu.dot_dimension_numbers<[1], [0], [0], [1], [0, 0, 1, 1], [], []>} : vector<8x32xbf16>, vector<32x128xbf16>, vector<8x128xf32> -> vector<8x128xf32>
    %457 = arith.addf %454, %456 : vector<8x128xf32>
    %458 = vector.extract_strided_slice %457 {offsets = [0, 0], sizes = [8, 96], strides = [1, 1]} : vector<8x128xf32> to vector<8x96xf32>
    %459 = arith.negf %458 : vector<8x96xf32>
    %460 = math.exp %459 : vector<8x96xf32>
    %cst_190 = arith.constant 1.000000e+00 : f32
    %461 = vector.broadcast %cst_190 : f32 to vector<8x96xf32>
    %462 = arith.addf %461, %460 : vector<8x96xf32>
    %463 = arith.divf %461, %462 : vector<8x96xf32>
    %464 = vector.extract_strided_slice %463 {offsets = [0, 0], sizes = [8, 32], strides = [1, 1]} : vector<8x96xf32> to vector<8x32xf32>
    %465 = vector.extract_strided_slice %463 {offsets = [0, 32], sizes = [8, 32], strides = [1, 1]} : vector<8x96xf32> to vector<8x32xf32>
    %466 = vector.extract_strided_slice %463 {offsets = [0, 64], sizes = [8, 32], strides = [1, 1]} : vector<8x96xf32> to vector<8x32xf32>
    %467 = vector.extract_strided_slice %457 {offsets = [0, 96], sizes = [8, 32], strides = [1, 1]} : vector<8x128xf32> to vector<8x32xf32>
    %468 = math.tanh %467 : vector<8x32xf32>
    %469 = arith.mulf %465, %445 : vector<8x32xf32>
    %470 = arith.mulf %464, %468 : vector<8x32xf32>
    %471 = arith.addf %469, %470 : vector<8x32xf32>
    %472 = math.tanh %471 : vector<8x32xf32>
    %473 = arith.mulf %466, %472 : vector<8x32xf32>
    %474 = arith.index_cast %c5_i32_186 : i32 to index
    %c0_191 = arith.constant 0 : index
    %c0_192 = arith.constant 0 : index
    %475 = vector.load %arg11[%474, %c0_191, %c0_192] : memref<8x8x32xf32, #tpu.memory_space<vmem>>, vector<1x8x32xf32>
    %476 = vector.shape_cast %475 : vector<1x8x32xf32> to vector<8x32xf32>
    %477 = vector.shape_cast %473 : vector<8x32xf32> to vector<1x8x32xf32>
    tpu.vector_store %arg11[%474, %c0_191, %c0_192], %477 {strides = array<i32>} : memref<8x8x32xf32, #tpu.memory_space<vmem>>, vector<1x8x32xf32>,
    %c6_i32_193 = arith.constant 6 : i32
    %478 = arith.index_cast %c6_i32_193 : i32 to index
    %c0_194 = arith.constant 0 : index
    %c0_195 = arith.constant 0 : index
    %479 = vector.load %arg12[%478, %c0_194, %c0_195] : memref<8x8x128xf32, #tpu.memory_space<vmem>>, vector<1x8x128xf32>
    %480 = vector.shape_cast %479 : vector<1x8x128xf32> to vector<8x128xf32>
    %481 = arith.truncf %473 : vector<8x32xf32> to vector<8x32xbf16>
    %cst_196 = arith.constant dense<0.000000e+00> : vector<8x128xf32>
    %482 = tpu.matmul %481, %283, %cst_196 {dimension_numbers = #tpu.dot_dimension_numbers<[1], [0], [0], [1], [0, 0, 1, 1], [], []>} : vector<8x32xbf16>, vector<32x128xbf16>, vector<8x128xf32> -> vector<8x128xf32>
    %483 = arith.addf %480, %482 : vector<8x128xf32>
    %484 = vector.extract_strided_slice %483 {offsets = [0, 0], sizes = [8, 96], strides = [1, 1]} : vector<8x128xf32> to vector<8x96xf32>
    %485 = arith.negf %484 : vector<8x96xf32>
    %486 = math.exp %485 : vector<8x96xf32>
    %cst_197 = arith.constant 1.000000e+00 : f32
    %487 = vector.broadcast %cst_197 : f32 to vector<8x96xf32>
    %488 = arith.addf %487, %486 : vector<8x96xf32>
    %489 = arith.divf %487, %488 : vector<8x96xf32>
    %490 = vector.extract_strided_slice %489 {offsets = [0, 0], sizes = [8, 32], strides = [1, 1]} : vector<8x96xf32> to vector<8x32xf32>
    %491 = vector.extract_strided_slice %489 {offsets = [0, 32], sizes = [8, 32], strides = [1, 1]} : vector<8x96xf32> to vector<8x32xf32>
    %492 = vector.extract_strided_slice %489 {offsets = [0, 64], sizes = [8, 32], strides = [1, 1]} : vector<8x96xf32> to vector<8x32xf32>
    %493 = vector.extract_strided_slice %483 {offsets = [0, 96], sizes = [8, 32], strides = [1, 1]} : vector<8x128xf32> to vector<8x32xf32>
    %494 = math.tanh %493 : vector<8x32xf32>
    %495 = arith.mulf %491, %471 : vector<8x32xf32>
    %496 = arith.mulf %490, %494 : vector<8x32xf32>
    %497 = arith.addf %495, %496 : vector<8x32xf32>
    %498 = math.tanh %497 : vector<8x32xf32>
    %499 = arith.mulf %492, %498 : vector<8x32xf32>
    %500 = arith.index_cast %c6_i32_193 : i32 to index
    %c0_198 = arith.constant 0 : index
    %c0_199 = arith.constant 0 : index
    %501 = vector.load %arg11[%500, %c0_198, %c0_199] : memref<8x8x32xf32, #tpu.memory_space<vmem>>, vector<1x8x32xf32>
    %502 = vector.shape_cast %501 : vector<1x8x32xf32> to vector<8x32xf32>
    %503 = vector.shape_cast %499 : vector<8x32xf32> to vector<1x8x32xf32>
    tpu.vector_store %arg11[%500, %c0_198, %c0_199], %503 {strides = array<i32>} : memref<8x8x32xf32, #tpu.memory_space<vmem>>, vector<1x8x32xf32>,
    %c7_i32_200 = arith.constant 7 : i32
    %504 = arith.index_cast %c7_i32_200 : i32 to index
    %c0_201 = arith.constant 0 : index
    %c0_202 = arith.constant 0 : index
    %505 = vector.load %arg12[%504, %c0_201, %c0_202] : memref<8x8x128xf32, #tpu.memory_space<vmem>>, vector<1x8x128xf32>
    %506 = vector.shape_cast %505 : vector<1x8x128xf32> to vector<8x128xf32>
    %507 = arith.truncf %499 : vector<8x32xf32> to vector<8x32xbf16>
    %cst_203 = arith.constant dense<0.000000e+00> : vector<8x128xf32>
    %508 = tpu.matmul %507, %283, %cst_203 {dimension_numbers = #tpu.dot_dimension_numbers<[1], [0], [0], [1], [0, 0, 1, 1], [], []>} : vector<8x32xbf16>, vector<32x128xbf16>, vector<8x128xf32> -> vector<8x128xf32>
    %509 = arith.addf %506, %508 : vector<8x128xf32>
    %510 = vector.extract_strided_slice %509 {offsets = [0, 0], sizes = [8, 96], strides = [1, 1]} : vector<8x128xf32> to vector<8x96xf32>
    %511 = arith.negf %510 : vector<8x96xf32>
    %512 = math.exp %511 : vector<8x96xf32>
    %cst_204 = arith.constant 1.000000e+00 : f32
    %513 = vector.broadcast %cst_204 : f32 to vector<8x96xf32>
    %514 = arith.addf %513, %512 : vector<8x96xf32>
    %515 = arith.divf %513, %514 : vector<8x96xf32>
    %516 = vector.extract_strided_slice %515 {offsets = [0, 0], sizes = [8, 32], strides = [1, 1]} : vector<8x96xf32> to vector<8x32xf32>
    %517 = vector.extract_strided_slice %515 {offsets = [0, 32], sizes = [8, 32], strides = [1, 1]} : vector<8x96xf32> to vector<8x32xf32>
    %518 = vector.extract_strided_slice %515 {offsets = [0, 64], sizes = [8, 32], strides = [1, 1]} : vector<8x96xf32> to vector<8x32xf32>
    %519 = vector.extract_strided_slice %509 {offsets = [0, 96], sizes = [8, 32], strides = [1, 1]} : vector<8x128xf32> to vector<8x32xf32>
    %520 = math.tanh %519 : vector<8x32xf32>
    %521 = arith.mulf %517, %497 : vector<8x32xf32>
    %522 = arith.mulf %516, %520 : vector<8x32xf32>
    %523 = arith.addf %521, %522 : vector<8x32xf32>
    %524 = math.tanh %523 : vector<8x32xf32>
    %525 = arith.mulf %518, %524 : vector<8x32xf32>
    %526 = arith.index_cast %c7_i32_200 : i32 to index
    %c0_205 = arith.constant 0 : index
    %c0_206 = arith.constant 0 : index
    %527 = vector.load %arg11[%526, %c0_205, %c0_206] : memref<8x8x32xf32, #tpu.memory_space<vmem>>, vector<1x8x32xf32>
    %528 = vector.shape_cast %527 : vector<1x8x32xf32> to vector<8x32xf32>
    %529 = vector.shape_cast %525 : vector<8x32xf32> to vector<1x8x32xf32>
    tpu.vector_store %arg11[%526, %c0_205, %c0_206], %529 {strides = array<i32>} : memref<8x8x32xf32, #tpu.memory_space<vmem>>, vector<1x8x32xf32>,
    %c8_i32_207 = arith.constant 8 : i32
    %c0_208 = arith.constant 0 : index
    %c0_209 = arith.constant 0 : index
    %c0_210 = arith.constant 0 : index
    %530 = vector.load %arg11[%c0_208, %c0_209, %c0_210] : memref<8x8x32xf32, #tpu.memory_space<vmem>>, vector<8x8x32xf32>
    %cst_211 = arith.constant dense<0.000000e+00> : vector<8x32xf32>
    %531 = vector.multi_reduction <add>, %530, %cst_211 [0] : vector<8x8x32xf32> to vector<8x32xf32>
    %cst_212 = arith.constant 1.250000e-01 : f32
    %532 = vector.broadcast %cst_212 : f32 to vector<8x32xf32>
    %533 = arith.mulf %531, %532 : vector<8x32xf32>
    %c0_213 = arith.constant 0 : index
    %c0_214 = arith.constant 0 : index
    %534 = vector.load %arg8[%c0_213, %c0_214] : memref<32x128xf32, #tpu.memory_space<vmem>>, vector<32x128xf32>
    %cst_215 = arith.constant dense<0.000000e+00> : vector<8x128xf32>
    %535 = tpu.matmul %533, %534, %cst_215 {dimension_numbers = #tpu.dot_dimension_numbers<[1], [0], [0], [1], [0, 0, 1, 1], [], []>} : vector<8x32xf32>, vector<32x128xf32>, vector<8x128xf32> -> vector<8x128xf32>
    %c0_216 = arith.constant 0 : index
    %c0_217 = arith.constant 0 : index
    %536 = vector.load %arg9[%c0_216, %c0_217] : memref<1x128xf32, #tpu.memory_space<vmem>>, vector<1x128xf32>
    %537 = vector.broadcast %536 : vector<1x128xf32> to vector<8x128xf32>
    %538 = arith.addf %535, %537 : vector<8x128xf32>
    %c0_218 = arith.constant 0 : index
    %c0_219 = arith.constant 0 : index
    %539 = vector.load %arg10[%c0_218, %c0_219] : memref<8x128xf32, #tpu.memory_space<vmem>>, vector<8x128xf32>
    tpu.vector_store %arg10[%c0_218, %c0_219], %538 {strides = array<i32>} : memref<8x128xf32, #tpu.memory_space<vmem>>, vector<8x128xf32>,
    return
  }
  func.func @transform_0(%arg0: i32) -> (i32, i32, i32) {
    %c0_i32 = arith.constant 0 : i32
    %c0_i32_0 = arith.constant 0 : i32
    %c0_i32_1 = arith.constant 0 : i32
    return %c0_i32, %arg0, %c0_i32_0 : i32, i32, i32
  }
  func.func @transform_1(%arg0: i32) -> (i32, i32) {
    %c0_i32 = arith.constant 0 : i32
    %c0_i32_0 = arith.constant 0 : i32
    %c0_i32_1 = arith.constant 0 : i32
    return %c0_i32, %c0_i32_0 : i32, i32
  }
  func.func @transform_2(%arg0: i32) -> (i32, i32) {
    %c0_i32 = arith.constant 0 : i32
    %c0_i32_0 = arith.constant 0 : i32
    %c0_i32_1 = arith.constant 0 : i32
    return %c0_i32, %c0_i32_0 : i32, i32
  }
  func.func @transform_3(%arg0: i32) -> (i32, i32) {
    %c0_i32 = arith.constant 0 : i32
    %c0_i32_0 = arith.constant 0 : i32
    %c0_i32_1 = arith.constant 0 : i32
    return %c0_i32, %c0_i32_0 : i32, i32
  }
  func.func @transform_4(%arg0: i32) -> (i32, i32) {
    %c0_i32 = arith.constant 0 : i32
    %c0_i32_0 = arith.constant 0 : i32
    %c0_i32_1 = arith.constant 0 : i32
    return %c0_i32, %c0_i32_0 : i32, i32
  }
  func.func @transform_5(%arg0: i32) -> (i32, i32) {
    %c0_i32 = arith.constant 0 : i32
    %c0_i32_0 = arith.constant 0 : i32
    %c0_i32_1 = arith.constant 0 : i32
    return %c0_i32, %c0_i32_0 : i32, i32
  }
  func.func @transform_6(%arg0: i32) -> (i32, i32) {
    %c0_i32 = arith.constant 0 : i32
    %c0_i32_0 = arith.constant 0 : i32
    %c0_i32_1 = arith.constant 0 : i32
    return %c0_i32, %c0_i32_0 : i32, i32
  }
  func.func @transform_7(%arg0: i32) -> (i32, i32) {
    %c0_i32 = arith.constant 0 : i32
    %c0_i32_0 = arith.constant 0 : i32
    %c0_i32_1 = arith.constant 0 : i32
    return %c0_i32, %c0_i32_0 : i32, i32
  }
  func.func @transform_8(%arg0: i32) -> (i32, i32) {
    %c0_i32 = arith.constant 0 : i32
    %c0_i32_0 = arith.constant 0 : i32
    %c0_i32_1 = arith.constant 0 : i32
    return %c0_i32, %c0_i32_0 : i32, i32
  }
  func.func @transform_9(%arg0: i32) -> (i32, i32) {
    %c0_i32 = arith.constant 0 : i32
    %c0_i32_0 = arith.constant 0 : i32
    return %arg0, %c0_i32 : i32, i32
  }
}

</mosaic_0001>

<bundles_post_ra>
// kernel: rnn_forward.1
= control target key start
LH: loop header
LB: loop body
LE: loop exit
PB: predicated region body
PF: predicated region fallthrough
CT: control target
= control target key end

     0   :  { %v2110_v1 = vmov 0.0   ;;  %vm2111_vm0 = vmmov 0   ;;  %vm79_vm1 = vcmask 261120   ;;  %v2112_v11 = vmov 0   ;;  %s2113_s25 = smov 32   ;;  %s2599_s1 = inlined_call_operand.vmem [shape: bf16[32,128], index: 1, kind: input, shape index: {}]   ;;  %s2600_s2 = inlined_call_operand.vmem [shape: bf16[32,128], index: 2, kind: input, shape index: {}]   ;;  %s2601_s0 = inlined_call_operand.vmem [shape: f32[8,8,32], index: 0, kind: input, shape index: {}]   ;;  %s2602_s3 = inlined_call_operand.vmem [shape: f32[1,128], index: 3, kind: input, shape index: {}]   ;;  %s2603_s4 = inlined_call_operand.vmem [shape: bf16[32,128], index: 4, kind: input, shape index: {}]   ;;  %s2604_s5 = inlined_call_operand.vmem [shape: bf16[32,128], index: 5, kind: input, shape index: {}]   ;;  %s2605_s6 = inlined_call_operand.vmem [shape: f32[1,128], index: 6, kind: input, shape index: {}]   ;;  %s2606_s7 = inlined_call_operand.vmem [shape: f32[32,128], index: 7, kind: input, shape index: {}]   ;;  %s2607_s8 = inlined_call_operand.vmem [shape: f32[1,128], index: 8, kind: input, shape index: {}]   ;;  %s2608_s9 = inlined_call_operand.vmem [shape: f32[8,128], index: 9, kind: output, shape index: {}]  }
   0x1   :  { %v1974_v0 = vld [vmem:[%s2599_s1] sm:$0xff]   ;;  %1811 = vmatprep.subr.bf16.mxu1 %v2110_v1  ;;  %1815 = vmatprep.mubr.msk.bf16.mxu1 %vm2111_vm0, %v2110_v1  ;;  %v1976_v3 = vld [vmem:[%s2599_s1 + $0x8] sm:$0xff]   ;;  %v1678_v7 = vld [vmem:[%s2601_s0 + $0x10] sm:$0xff] }
   0x2   :  { %v2175_v2 = vld [vmem:[%s2600_s2] sm:$0xff]   ;;  %1799 = vmatprep.subr.bf16.mxu0 %v1974_v0  ;;  %v2184_v4 = vld [vmem:[%s2600_s2 + $0x8] sm:$0xff]   ;;  %v1679_v9 = vld [vmem:[%s2601_s0 + $0x18] sm:$0xff] }
   0x3   :  { %1800 = vmatpush3.bf16.msra.mxu0 %v1974_v0  ;;  %1812 = vmatpush3.bf16.msra.mxu1 %v2175_v2  ;;  %v33_v5 = vld [vmem:[%s2601_s0] sm:$0xff]  ;;  %v1677_v6 = vld [vmem:[%s2601_s0 + $0x8] sm:$0xff]  ;;  %v58_v10 = vpack.c.bf16 %v1679_v9, %v1678_v7  ;;  %v1682_v56 = vld [vmem:[%s2601_s0 + $0x30] sm:$0xff] }
   0x4   :  { %1801 = vmatprep.subr.bf16.mxu0 %v1976_v3  ;;  %1813 = vmatprep.subr.bf16.mxu1 %v2110_v1  ;;  %v57_v8 = vpack.c.bf16 %v1677_v6, %v33_v5  ;;  %v2218_v12 = vld [vmem:[%s2602_s3] ss:$0 sm:$0xff]  ;;  %s2114_s3 = smov 64   ;;  %v1681_v55 = vld [vmem:[%s2601_s0 + $0x28] sm:$0xff]  ;;  %v1683_v58 = vld [vmem:[%s2601_s0 + $0x38] sm:$0xff] }
   0x5   :  { %v1680_v54 = vld [vmem:[%s2601_s0 + $0x20] sm:$0xff]  ;;  %v60_v59 = vpack.c.bf16 %v1683_v58, %v1682_v56 }
   0x6   :  { %1803 = vmatprep.mubr.msk.bf16.mxu0 %vm79_vm1, %v57_v8  ;;  %v59_v57 = vpack.c.bf16 %v1681_v55, %v1680_v54 }
   0x7   :  { %1802 = vmatpush3.bf16.msra.mxu0 %v1976_v3  ;;  %1814 = vmatpush3.bf16.msra.mxu1 %v2184_v4 }
   0x8   :  { %1819 = vmatprep.subr.bf16.mxu1 %v2110_v1  ;;  %1827 = vmatprep.subr.bf16.mxu0 %v2110_v1 }
   0xa   :  { %1804 = vmatmul.mubr.msk.bf16.vlgmr.msra.gmra.mrb[0].mxu0 %vm79_vm1, %v58_v10  ;;  %1816 = vmatmul.mubr.bf16.vlgmr.msra.gmra.mrb[0].mxu1 %v2112_v11 }
   0xb   :  { %1820 = vmatpush3.bf16.msra.mxu1 %v2175_v2  ;;  %1823 = vmatprep.mubr.msk.bf16.mxu1 %vm2111_vm0, %v2110_v1 }
   0xc   :  { %1821 = vmatprep.subr.bf16.mxu1 %v2110_v1  ;;  %1828 = vmatpush3.bf16.msra.mxu0 %v2175_v2 }
   0xd   :  { %1829 = vmatprep.subr.bf16.mxu0 %v2110_v1  ;;  %1807 = vmatprep.mubr.msk.bf16.mxu0 %vm79_vm1, %v59_v57 }
   0xf   :  { %1822 = vmatpush3.bf16.msra.mxu1 %v2184_v4 }
  0x10   :  { %1830 = vmatpush3.bf16.msra.mxu0 %v2184_v4  ;;  %1835 = vmatprep.subr.bf16.mxu1 %v2110_v1 }
  0x11   :  { %1843 = vmatprep.subr.bf16.mxu0 %v2110_v1 }
  0x12   :  { %1808 = vmatmul.mubr.msk.bf16.gmra.mrb[4].mxu0 %vm79_vm1, %v60_v59 }
  0x13   :  { %1831 = vmatprep.mubr.msk.bf16.mxu0 %vm2111_vm0, %v2110_v1 }
  0xdd   :  { %v2220_v13 = vpop.f32.mrb[0].mxu0  ;;  %v222_v14 = vpop.f32.mrb[0].mxu1 }
  0xde   :  { %v126_v15 = vpop.f32.mrb[1].mxu0  ;;  %v1817_v16 = vpop.f32.mrb[1].mxu1  ;;  %v135_v8 = vadd.f32 %v2220_v13, %v2218_v12 }
  0xdf   :  { %v127_v17 = vadd.f32 %v2218_v12, %v126_v15  ;;  %v2223_v18 = vpop.f32.mrb[2].mxu0  ;;  %v225_v19 = vpop.f32.mrb[2].mxu1 }
  0xe0   :  { %v129_v20 = vpop.f32.mrb[3].mxu0  ;;  %v1818_v21 = vpop.f32.mrb[3].mxu1 }
  0xe1   :  { %v228_v22 = vadd.f32 %v222_v14, %v127_v17  ;;  %v130_v38 = vadd.f32 %v2218_v12, %v129_v20 }
  0xe3   :  { %1982 = vtanh.f32 %v228_v22  ;;  %v1693_v24 = vmul.f32 -1.442695, %v228_v22 }
  0xe5   :  { %1984 = vpow2.f32 %v1693_v24  ;;  %v2265_v0 = vpop.f32.mrb[4].mxu0 }
  0xe6   :  { %v2267_v3 = vpop.f32.mrb[5].mxu0 }
  0xe7   :  { %v2269_v5 = vpop.f32.mrb[6].mxu0 }
  0xe8   :  { %v2271_v6 = vpop.f32.mrb[7].mxu0 }
  0xed   :  { %v1983_v23 = vpop.eup %1982 }
  0xee   :  { %238 = vrot.lane.b32.xlu0 %v1983_v23, %s2113_s25 }
  0xef   :  { %v1985_v25 = vpop.eup %1984 }
  0xf0   :  { %v232_v26 = vadd.f32 1.0, %v1985_v25 }
  0xf2   :  { %1986 = vrcp.f32 %v232_v26 }
  0xfc   :  { %v1987_v27 = vpop.eup %1986 }
  0xfd   :  { %v236_v30 = vmul.f32 0.0, %v1987_v27 }
 0x160   :  { %v239_v28 = vpop.permute.xlu0 %238 }
 0x161   :  { %v241_v29 = vmul.f32 %v1987_v27, %v239_v28 }
 0x163   :  { %243 = vrot.lane.b32.xlu0 %v241_v29, %s2113_s25 }
 0x1d5   :  { %v244_v31 = vpop.permute.xlu0 %243 }
 0x1d6   :  { %v246_v32 = vadd.f32 %v244_v31, %v236_v30 }
 0x1d8   :  { %1988 = vtanh.f32 %v246_v32 }
 0x1e2   :  { %v1989_v33 = vpop.eup %1988 }
 0x1e3   :  { %249 = vrot.lane.b32.xlu1 %v1989_v33, %s2113_s25 }
 0x255   :  { %v250_v34 = vpop.permute.xlu1 %249 }
 0x256   :  { %v2228_v35 = vmul.f32 %v1987_v27, %v250_v34 }
 0x258   :  { %v259_v36 = vpack.c.bf16 %v2228_v35, %v2228_v35 }
 0x25a   :  { %261 = vrot.lane.b32.xlu1 %v259_v36, %s2114_s3 }
 0x2cc   :  { %v262_v37 = vpop.permute.xlu1 %261 }
 0x2cd   :  { %1824 = vmatmul.mubr.msk.bf16.vlgmr.msra.gmra.mrb[4].mxu1 %vm79_vm1, %v262_v37 }
 0x2ce   :  { %1836 = vmatpush3.bf16.msra.mxu1 %v2175_v2  ;;  %1839 = vmatprep.mubr.msk.bf16.mxu1 %vm2111_vm0, %v2110_v1 }
 0x2cf   :  { %1837 = vmatprep.subr.bf16.mxu1 %v2110_v1 }
 0x2d2   :  { %1838 = vmatpush3.bf16.msra.mxu1 %v2184_v4 }
 0x2d3   :  { %1851 = vmatprep.subr.bf16.mxu1 %v2110_v1 }
 0x3a0   :  { %v300_v39 = vpop.f32.mrb[4].mxu1 }
 0x3a1   :  { %v306_v40 = vadd.f32 %v300_v39, %v130_v38  ;;  %v1825_v41 = vpop.f32.mrb[5].mxu1 }
 0x3a2   :  { %v303_v42 = vpop.f32.mrb[6].mxu1 }
 0x3a3   :  { %1990 = vtanh.f32 %v306_v40  ;;  %v1826_v43 = vpop.f32.mrb[7].mxu1  ;;  %v1695_v45 = vmul.f32 -1.442695, %v306_v40 }
 0x3a5   :  { %1992 = vpow2.f32 %v1695_v45 }
 0x3ad   :  { %v1991_v44 = vpop.eup %1990 }
 0x3ae   :  { %316 = vrot.lane.b32.xlu0 %v1991_v44, %s2113_s25 }
 0x3af   :  { %v1993_v46 = vpop.eup %1992 }
 0x3b0   :  { %v310_v47 = vadd.f32 1.0, %v1993_v46 }
 0x3b2   :  { %1994 = vrcp.f32 %v310_v47 }
 0x3bc   :  { %v1995_v48 = vpop.eup %1994 }
 0x3bd   :  { %v314_v51 = vmul.f32 %v1995_v48, %v246_v32  ;;  %v138_v32 = vadd.f32 %v2223_v18, %v2218_v12 }
 0x420   :  { %v317_v49 = vpop.permute.xlu0 %316 }
 0x421   :  { %v319_v50 = vmul.f32 %v1995_v48, %v317_v49 }
 0x423   :  { %321 = vrot.lane.b32.xlu1 %v319_v50, %s2113_s25 }
 0x495   :  { %v322_v52 = vpop.permute.xlu1 %321 }
 0x496   :  { %v324_v53 = vadd.f32 %v322_v52, %v314_v51 }
 0x498   :  { %1996 = vtanh.f32 %v324_v53 }
 0x4a2   :  { %v1997_v60 = vpop.eup %1996 }
 0x4a3   :  { %327 = vrot.lane.b32.xlu0 %v1997_v60, %s2113_s25 }
 0x515   :  { %v328_v61 = vpop.permute.xlu0 %327 }
 0x516   :  { %v2260_v62 = vmul.f32 %v1995_v48, %v328_v61 }
 0x518   :  { %v338_v63 = vpack.c.bf16 %v2260_v62, %v2260_v62 }
 0x51a   :  { %340 = vrot.lane.b32.xlu1 %v338_v63, %s2114_s3 }
 0x58c   :  { %v341_v7 = vpop.permute.xlu1 %340 }
 0x58d   :  { %1832 = vmatmul.mubr.msk.bf16.vlgmr.msra.gmra.mrb[8].mxu0 %vm79_vm1, %v341_v7 }
 0x58e   :  { %1844 = vmatpush3.bf16.msra.mxu0 %v2175_v2  ;;  %1847 = vmatprep.mubr.msk.bf16.mxu0 %vm2111_vm0, %v2110_v1 }
 0x58f   :  { %1845 = vmatprep.subr.bf16.mxu0 %v2110_v1 }
 0x592   :  { %1846 = vmatpush3.bf16.msra.mxu0 %v2184_v4 }
 0x593   :  { %1859 = vmatprep.subr.bf16.mxu0 %v2110_v1 }
 0x660   :  { %v379_v9 = vpop.f32.mrb[8].mxu0 }
 0x661   :  { %v385_v10 = vadd.f32 %v379_v9, %v135_v8  ;;  %v1833_v14 = vpop.f32.mrb[9].mxu0 }
 0x662   :  { %v382_v15 = vpop.f32.mrb[10].mxu0 }
 0x663   :  { %1998 = vtanh.f32 %v385_v10  ;;  %v1834_v16 = vpop.f32.mrb[11].mxu0  ;;  %v1697_v19 = vmul.f32 -1.442695, %v385_v10 }
 0x665   :  { %2000 = vpow2.f32 %v1697_v19 }
 0x66d   :  { %v1999_v17 = vpop.eup %1998 }
 0x66e   :  { %395 = vrot.lane.b32.xlu0 %v1999_v17, %s2113_s25 }
 0x66f   :  { %v2001_v20 = vpop.eup %2000 }
 0x670   :  { %v389_v21 = vadd.f32 1.0, %v2001_v20 }
 0x672   :  { %2002 = vrcp.f32 %v389_v21  ;;  %v146_v21 = vadd.f32 %v2218_v12, %v2271_v6 }
 0x67c   :  { %v2003_v22 = vpop.eup %2002 }
 0x67d   :  { %v393_v13 = vmul.f32 %v2003_v22, %v324_v53  ;;  %v143_v53 = vadd.f32 %v2218_v12, %v2267_v3 }
 0x6e0   :  { %v396_v23 = vpop.permute.xlu0 %395 }
 0x6e1   :  { %v398_v24 = vmul.f32 %v2003_v22, %v396_v23 }
 0x6e3   :  { %400 = vrot.lane.b32.xlu1 %v398_v24, %s2113_s25 }
 0x755   :  { %v401_v25 = vpop.permute.xlu1 %400 }
 0x756   :  { %v403_v26 = vadd.f32 %v401_v25, %v393_v13 }
 0x758   :  { %2004 = vtanh.f32 %v403_v26 }
 0x762   :  { %v2005_v27 = vpop.eup %2004 }
 0x763   :  { %406 = vrot.lane.b32.xlu0 %v2005_v27, %s2113_s25 }
 0x7d5   :  { %v407_v28 = vpop.permute.xlu0 %406 }
 0x7d6   :  { %v2285_v29 = vmul.f32 %v2003_v22, %v407_v28 }
 0x7d8   :  { %v417_v30 = vpack.c.bf16 %v2285_v29, %v2285_v29 }
 0x7da   :  { %419 = vrot.lane.b32.xlu1 %v417_v30, %s2114_s3 }
 0x84c   :  { %v420_v31 = vpop.permute.xlu1 %419 }
 0x84d   :  { %1840 = vmatmul.mubr.msk.bf16.vlgmr.msra.gmra.mrb[8].mxu1 %vm79_vm1, %v420_v31 }
 0x84e   :  { %1852 = vmatpush3.bf16.msra.mxu1 %v2175_v2  ;;  %1855 = vmatprep.mubr.msk.bf16.mxu1 %vm2111_vm0, %v2110_v1 }
 0x84f   :  { %1853 = vmatprep.subr.bf16.mxu1 %v2110_v1 }
 0x852   :  { %1854 = vmatpush3.bf16.msra.mxu1 %v2184_v4 }
 0x853   :  { %1867 = vmatprep.subr.bf16.mxu1 %v2110_v1 }
 0x920   :  { %v458_v33 = vpop.f32.mrb[8].mxu1 }
 0x921   :  { %v464_v34 = vadd.f32 %v458_v33, %v138_v32  ;;  %v1841_v36 = vpop.f32.mrb[9].mxu1 }
 0x922   :  { %v461_v37 = vpop.f32.mrb[10].mxu1 }
 0x923   :  { %2006 = vtanh.f32 %v464_v34  ;;  %v1842_v38 = vpop.f32.mrb[11].mxu1  ;;  %v1699_v40 = vmul.f32 -1.442695, %v464_v34 }
 0x925   :  { %2008 = vpow2.f32 %v1699_v40  ;;  %v151_v40 = vadd.f32 %v2265_v0, %v2218_v12 }
 0x92d   :  { %v2007_v39 = vpop.eup %2006 }
 0x92e   :  { %474 = vrot.lane.b32.xlu0 %v2007_v39, %s2113_s25 }
 0x92f   :  { %v2009_v41 = vpop.eup %2008 }
 0x930   :  { %v468_v42 = vadd.f32 1.0, %v2009_v41 }
 0x932   :  { %2010 = vrcp.f32 %v468_v42 }
 0x93c   :  { %v2011_v43 = vpop.eup %2010 }
 0x93d   :  { %v472_v18 = vmul.f32 %v2011_v43, %v403_v26 }
 0x9a0   :  { %v475_v44 = vpop.permute.xlu0 %474 }
 0x9a1   :  { %v477_v45 = vmul.f32 %v2011_v43, %v475_v44 }
 0x9a3   :  { %479 = vrot.lane.b32.xlu1 %v477_v45, %s2113_s25 }
 0xa15   :  { %v480_v46 = vpop.permute.xlu1 %479 }
 0xa16   :  { %v482_v47 = vadd.f32 %v480_v46, %v472_v18 }
 0xa18   :  { %2012 = vtanh.f32 %v482_v47 }
 0xa22   :  { %v2013_v48 = vpop.eup %2012 }
 0xa23   :  { %485 = vrot.lane.b32.xlu0 %v2013_v48, %s2113_s25 }
 0xa95   :  { %v486_v49 = vpop.permute.xlu0 %485 }
 0xa96   :  { %v2302_v50 = vmul.f32 %v2011_v43, %v486_v49 }
 0xa98   :  { %v496_v51 = vpack.c.bf16 %v2302_v50, %v2302_v50 }
 0xa9a   :  { %498 = vrot.lane.b32.xlu1 %v496_v51, %s2114_s3 }
 0xb0c   :  { %v499_v52 = vpop.permute.xlu1 %498 }
 0xb0d   :  { %1848 = vmatmul.mubr.msk.bf16.vlgmr.msra.gmra.mrb[12].mxu0 %vm79_vm1, %v499_v52 }
 0xb0e   :  { %1860 = vmatpush3.bf16.msra.mxu0 %v2175_v2  ;;  %1863 = vmatprep.mubr.msk.bf16.mxu0 %vm2111_vm0, %v2110_v1 }
 0xb0f   :  { %1861 = vmatprep.subr.bf16.mxu0 %v2110_v1 }
 0xb12   :  { %1862 = vmatpush3.bf16.msra.mxu0 %v2184_v4 }
 0xbe0   :  { %v537_v54 = vpop.f32.mrb[12].mxu0 }
 0xbe1   :  { %v543_v55 = vadd.f32 %v537_v54, %v143_v53  ;;  %v1849_v56 = vpop.f32.mrb[13].mxu0 }
 0xbe2   :  { %v540_v57 = vpop.f32.mrb[14].mxu0 }
 0xbe3   :  { %2014 = vtanh.f32 %v543_v55  ;;  %v1850_v58 = vpop.f32.mrb[15].mxu0  ;;  %v1701_v60 = vmul.f32 -1.442695, %v543_v55  ;;  %v1978_v57 = vld [vmem:[%s2603_s4] sm:$0xff]  }
 0xbe4   :  { %1875 = vmatprep.subr.bf16.mxu0 %v1978_v57 }
 0xbe5   :  { %2016 = vpow2.f32 %v1701_v60 }
 0xbed   :  { %v2015_v59 = vpop.eup %2014 }
 0xbee   :  { %553 = vrot.lane.b32.xlu0 %v2015_v59, %s2113_s25 }
 0xbef   :  { %v2017_v61 = vpop.eup %2016 }
 0xbf0   :  { %v547_v63 = vadd.f32 1.0, %v2017_v61 }
 0xbf2   :  { %2018 = vrcp.f32 %v547_v63 }
 0xbfc   :  { %v2019_v7 = vpop.eup %2018 }
 0xbfd   :  { %v551_v3 = vmul.f32 %v2019_v7, %v482_v47 }
 0xc60   :  { %v554_v8 = vpop.permute.xlu0 %553 }
 0xc61   :  { %v556_v9 = vmul.f32 %v2019_v7, %v554_v8 }
 0xc63   :  { %558 = vrot.lane.b32.xlu1 %v556_v9, %s2113_s25 }
 0xcd5   :  { %v559_v10 = vpop.permute.xlu1 %558 }
 0xcd6   :  { %v561_v14 = vadd.f32 %v559_v10, %v551_v3  ;;  %v2377_v10 = vld [vmem:[%s2604_s5] sm:$0xff]  }
 0xcd8   :  { %2020 = vtanh.f32 %v561_v14 }
 0xce2   :  { %v2021_v15 = vpop.eup %2020 }
 0xce3   :  { %564 = vrot.lane.b32.xlu0 %v2021_v15, %s2113_s25 }
 0xd55   :  { %v565_v16 = vpop.permute.xlu0 %564 }
 0xd56   :  { %v2318_v17 = vmul.f32 %v2019_v7, %v565_v16 }
 0xd58   :  { %v575_v19 = vpack.c.bf16 %v2318_v17, %v2318_v17 }
 0xd5a   :  { %577 = vrot.lane.b32.xlu1 %v575_v19, %s2114_s3 }
 0xdcc   :  { %v578_v20 = vpop.permute.xlu1 %577 }
 0xdcd   :  { %1856 = vmatmul.mubr.msk.bf16.vlgmr.msra.gmra.mrb[12].mxu1 %vm79_vm1, %v578_v20 }
 0xdce   :  { %1868 = vmatpush3.bf16.msra.mxu1 %v2175_v2  ;;  %1871 = vmatprep.mubr.msk.bf16.mxu1 %vm2111_vm0, %v2110_v1 }
 0xdcf   :  { %1869 = vmatprep.subr.bf16.mxu1 %v2110_v1 }
 0xdd2   :  { %1870 = vmatpush3.bf16.msra.mxu1 %v2184_v4 }
 0xdd3   :  { %1887 = vmatprep.subr.bf16.mxu1 %v2110_v1 }
 0xea0   :  { %v616_v22 = vpop.f32.mrb[12].mxu1 }
 0xea1   :  { %v622_v23 = vadd.f32 %v616_v22, %v146_v21  ;;  %v1857_v24 = vpop.f32.mrb[13].mxu1 }
 0xea2   :  { %v619_v13 = vpop.f32.mrb[14].mxu1 }
 0xea3   :  { %2022 = vtanh.f32 %v622_v23  ;;  %v1858_v25 = vpop.f32.mrb[15].mxu1  ;;  %v1703_v2 = vmul.f32 -1.442695, %v622_v23 }
 0xea5   :  { %2024 = vpow2.f32 %v1703_v2 }
 0xead   :  { %v2023_v26 = vpop.eup %2022 }
 0xeae   :  { %632 = vrot.lane.b32.xlu0 %v2023_v26, %s2113_s25  ;;  %v2414_v26 = vld [vmem:[%s2605_s6] ss:$0 sm:$0xff] }
 0xeaf   :  { %v2025_v27 = vpop.eup %2024 }
 0xeb0   :  { %v626_v28 = vadd.f32 1.0, %v2025_v27 }
 0xeb2   :  { %2026 = vrcp.f32 %v626_v28 }
 0xebc   :  { %v2027_v4 = vpop.eup %2026 }
 0xebd   :  { %v630_v6 = vmul.f32 %v2027_v4, %v561_v14  ;;  %v2385_v14 = vld [vmem:[%s2604_s5 + $0x8] sm:$0xff]  }
 0xf20   :  { %v633_v30 = vpop.permute.xlu0 %632 }
 0xf21   :  { %v635_v31 = vmul.f32 %v2027_v4, %v633_v30 }
 0xf23   :  { %637 = vrot.lane.b32.xlu1 %v635_v31, %s2113_s25 }
 0xf95   :  { %v638_v32 = vpop.permute.xlu1 %637 }
 0xf96   :  { %v640_v33 = vadd.f32 %v638_v32, %v630_v6 }
 0xf98   :  { %2028 = vtanh.f32 %v640_v33 }
 0xfa2   :  { %v2029_v34 = vpop.eup %2028 }
 0xfa3   :  { %643 = vrot.lane.b32.xlu0 %v2029_v34, %s2113_s25 }
0x1015   :  { %v644_v36 = vpop.permute.xlu0 %643 }
0x1016   :  { %v2335_v37 = vmul.f32 %v2027_v4, %v644_v36 }
0x1018   :  { %v654_v38 = vpack.c.bf16 %v2335_v37, %v2335_v37 }
0x101a   :  { %656 = vrot.lane.b32.xlu1 %v654_v38, %s2114_s3 }
0x108c   :  { %v657_v39 = vpop.permute.xlu1 %656 }
0x108d   :  { %1864 = vmatmul.mubr.msk.bf16.vlgmr.msra.gmra.mrb[16].mxu0 %vm79_vm1, %v657_v39 }
0x108e   :  { %1876 = vmatpush3.bf16.msra.mxu0 %v1978_v57 }
0x1160   :  { %v695_v41 = vpop.f32.mrb[16].mxu0 }
0x1161   :  { %v701_v42 = vadd.f32 %v695_v41, %v151_v40  ;;  %v1865_v43 = vpop.f32.mrb[17].mxu0 }
0x1162   :  { %v698_v44 = vpop.f32.mrb[18].mxu0 }
0x1163   :  { %2030 = vtanh.f32 %v701_v42  ;;  %v1866_v45 = vpop.f32.mrb[19].mxu0  ;;  %v1705_v46 = vmul.f32 -1.442695, %v701_v42 }
0x1165   :  { %2032 = vpow2.f32 %v1705_v46 }
0x116d   :  { %v2031_v18 = vpop.eup %2030 }
0x116e   :  { %711 = vrot.lane.b32.xlu0 %v2031_v18, %s2113_s25 }
0x116f   :  { %v2033_v47 = vpop.eup %2032 }
0x1170   :  { %v705_v48 = vadd.f32 1.0, %v2033_v47 }
0x1172   :  { %2034 = vrcp.f32 %v705_v48 }
0x117c   :  { %v2035_v49 = vpop.eup %2034 }
0x117d   :  { %v709_v0 = vmul.f32 %v2035_v49, %v640_v33 }
0x11e0   :  { %v712_v51 = vpop.permute.xlu0 %711 }
0x11e1   :  { %v714_v52 = vmul.f32 %v2035_v49, %v712_v51 }
0x11e3   :  { %716 = vrot.lane.b32.xlu1 %v714_v52, %s2113_s25 }
0x11e7   :  { %254 = vrot.lane.b32.xlu1 %v2228_v35, %s2114_s3  ;;  %v1979_v35 = vld [vmem:[%s2603_s4 + $0x8] sm:$0xff]  }
0x11e8   :  { %1877 = vmatprep.subr.bf16.mxu0 %v1979_v35 }
0x11e9   :  { %1878 = vmatpush3.bf16.msra.mxu0 %v1979_v35 }
0x11ea   :  { %1903 = vmatprep.subr.bf16.mxu0 %v2110_v1 }
0x11eb   :  { %411 = vrot.lane.b32.xlu1 %v2285_v29, %s2114_s3 }
0x1255   :  { %v717_v53 = vpop.permute.xlu1 %716 }
0x1256   :  { %v2349_v54 = vadd.f32 %v717_v53, %v709_v0 }
0x1258   :  { %2036 = vtanh.f32 %v2349_v54 }
0x1259   :  { %v255_v55 = vpop.permute.xlu1 %254 }
0x125a   :  { %257 = vst.msk [vmem:[#allocation2] sm:$0xff] %vm79_vm1, %v255_v55 }
0x125d   :  { %v412_v56 = vpop.permute.xlu1 %411 }
0x125e   :  { %415 = vst.msk [vmem:[#allocation2 + $0x10] sm:$0xff] %vm79_vm1, %v412_v56 }
0x1261   :  { %v811_v7 = vld [vmem:[#allocation2] sm:$0xff] }
0x1262   :  { %v2037_v29 = vpop.eup %2036 }
0x1263   :  { %722 = vrot.lane.b32.xlu0 %v2037_v29, %s2113_s25 }
0x1267   :  { %332 = vrot.lane.b32.xlu0 %v2260_v62, %s2114_s3 }
0x126b   :  { %490 = vrot.lane.b32.xlu0 %v2302_v50, %s2114_s3  ;;  %v813_v50 = vld [vmem:[#allocation2 + $0x10] sm:$0xff] }
0x12d5   :  { %v723_v58 = vpop.permute.xlu0 %722 }
0x12d6   :  { %v2366_v59 = vmul.f32 %v2035_v49, %v723_v58 }
0x12d8   :  { %v733_v60 = vpack.c.bf16 %v2366_v59, %v2366_v59 }
0x12d9   :  { %v333_v61 = vpop.permute.xlu0 %332 }
0x12da   :  { %336 = vst.msk [vmem:[#allocation2 + $0x8] sm:$0xff] %vm79_vm1, %v333_v61  ;;  %735 = vrot.lane.b32.xlu1 %v733_v60, %s2114_s3 }
0x12dd   :  { %v491_v63 = vpop.permute.xlu0 %490 }
0x12de   :  { %494 = vst.msk [vmem:[#allocation2 + $0x18] sm:$0xff] %vm79_vm1, %v491_v63 }
0x12e1   :  { %v812_v8 = vld [vmem:[#allocation2 + $0x8] sm:$0xff] }
0x12e2   :  { %v828_v62 = vpack.c.bf16 %v812_v8, %v811_v7 }
0x12e4   :  { %1879 = vmatprep.mubr.msk.bf16.mxu0 %vm79_vm1, %v828_v62 }
0x12e5   :  { %v814_v9 = vld [vmem:[#allocation2 + $0x18] sm:$0xff] }
0x12e6   :  { %v829_v3 = vpack.c.bf16 %v814_v9, %v813_v50 }
0x12e8   :  { %1880 = vmatmul.mubr.msk.bf16.vlgmr.msra.gmra.mrb[20].mxu0 %vm79_vm1, %v829_v3 }
0x12e9   :  { %1904 = vmatpush3.bf16.msra.mxu0 %v2377_v10 }
0x12ea   :  { %1905 = vmatprep.subr.bf16.mxu0 %v2110_v1 }
0x12ed   :  { %1906 = vmatpush3.bf16.msra.mxu0 %v2385_v14 }
0x12ee   :  { %1919 = vmatprep.subr.bf16.mxu0 %v2110_v1 }
0x134c   :  { %v736_v15 = vpop.permute.xlu1 %735 }
0x134d   :  { %1872 = vmatmul.mubr.msk.bf16.vlgmr.msra.gmra.mrb[16].mxu1 %vm79_vm1, %v736_v15 }
0x134e   :  { %1888 = vmatpush3.bf16.msra.mxu1 %v2377_v10  ;;  %1891 = vmatprep.mubr.msk.bf16.mxu1 %vm2111_vm0, %v2110_v1 }
0x134f   :  { %1889 = vmatprep.subr.bf16.mxu1 %v2110_v1 }
0x1352   :  { %1890 = vmatpush3.bf16.msra.mxu1 %v2385_v14 }
0x1353   :  { %1895 = vmatprep.subr.bf16.mxu1 %v2110_v1 }
0x1355   :  { %1892 = vmatmul.mubr.bf16.vlgmr.msra.gmra.mrb[20].mxu1 %v2112_v11  ;;  %v154_v11 = vadd.f32 %v2269_v5, %v2218_v12 }
0x1356   :  { %1896 = vmatpush3.bf16.msra.mxu1 %v2377_v10  ;;  %1899 = vmatprep.mubr.msk.bf16.mxu1 %vm2111_vm0, %v2110_v1 }
0x1357   :  { %1897 = vmatprep.subr.bf16.mxu1 %v2110_v1 }
0x135a   :  { %1898 = vmatpush3.bf16.msra.mxu1 %v2385_v14 }
0x135b   :  { %1911 = vmatprep.subr.bf16.mxu1 %v2110_v1 }
0x13bb   :  { %v2403_v16 = vpop.f32.mrb[20].mxu0 }
0x13bc   :  { %v896_v19 = vpop.f32.mrb[21].mxu0 }
0x13bd   :  { %v2405_v20 = vpop.f32.mrb[22].mxu0  ;;  %v897_v2 = vadd.f32 %v2414_v26, %v896_v19 }
0x13be   :  { %v2407_v21 = vpop.f32.mrb[23].mxu0 }
0x13bf   :  { %v900_v29 = vadd.f32 %v2414_v26, %v2407_v21 }
0x1420   :  { %v774_v22 = vpop.f32.mrb[16].mxu1 }
0x1421   :  { %v780_v23 = vadd.f32 %v774_v22, %v154_v11  ;;  %v1873_v24 = vpop.f32.mrb[17].mxu1 }
0x1422   :  { %v777_v13 = vpop.f32.mrb[18].mxu1 }
0x1423   :  { %v1874_v25 = vpop.f32.mrb[19].mxu1  ;;  %v1707_v43 = vmul.f32 -1.442695, %v780_v23 }
0x1428   :  { %v982_v27 = vpop.f32.mrb[20].mxu1 }
0x1429   :  { %v988_v28 = vadd.f32 %v982_v27, %v897_v2  ;;  %v1893_v4 = vpop.f32.mrb[21].mxu1 }
0x142a   :  { %v985_v30 = vpop.f32.mrb[22].mxu1 }
0x142b   :  { %2038 = vtanh.f32 %v988_v28  ;;  %v1894_v31 = vpop.f32.mrb[23].mxu1  ;;  %v1717_v12 = vmul.f32 -1.442695, %v988_v28 }
0x142d   :  { %2040 = vpow2.f32 %v1717_v12 }
0x1435   :  { %v2039_v6 = vpop.eup %2038 }
0x1436   :  { %998 = vrot.lane.b32.xlu0 %v2039_v6, %s2113_s25 }
0x1437   :  { %v2041_v5 = vpop.eup %2040 }
0x1438   :  { %v992_v32 = vadd.f32 1.0, %v2041_v5 }
0x143a   :  { %2042 = vrcp.f32 %v992_v32 }
0x1444   :  { %v2043_v33 = vpop.eup %2042 }
0x1445   :  { %v996_v38 = vmul.f32 0.0, %v2043_v33 }
0x14a8   :  { %v999_v34 = vpop.permute.xlu0 %998 }
0x14a9   :  { %v1001_v36 = vmul.f32 %v2043_v33, %v999_v34  ;;  %v905_v34 = vadd.f32 %v2403_v16, %v2414_v26 }
0x14ab   :  { %1003 = vrot.lane.b32.xlu1 %v1001_v36, %s2113_s25 }
0x151d   :  { %v1004_v39 = vpop.permute.xlu1 %1003 }
0x151e   :  { %v1006_v40 = vadd.f32 %v1004_v39, %v996_v38 }
0x1520   :  { %2044 = vtanh.f32 %v1006_v40 }
0x1521   :  { %2046 = vtanh.f32 %v780_v23 }
0x1522   :  { %2048 = vpow2.f32 %v1707_v43 }
0x152a   :  { %v2045_v41 = vpop.eup %2044 }
0x152b   :  { %1009 = vrot.lane.b32.xlu0 %v2045_v41, %s2113_s25  ;;  %v2047_v42 = vpop.eup %2046 }
0x152c   :  { %v2049_v44 = vpop.eup %2048 }
0x152d   :  { %v784_v45 = vadd.f32 1.0, %v2049_v44 }
0x152f   :  { %790 = vrot.lane.b32.xlu0 %v2047_v42, %s2113_s25  ;;  %2050 = vrcp.f32 %v784_v45 }
0x1539   :  { %v2051_v48 = vpop.eup %2050 }
0x153a   :  { %v788_v0 = vmul.f32 %v2051_v48, %v2349_v54 }
0x159d   :  { %v1010_v18 = vpop.permute.xlu0 %1009 }
0x159e   :  { %v2421_v46 = vmul.f32 %v2043_v33, %v1010_v18 }
0x15a0   :  { %v1019_v47 = vpack.c.bf16 %v2421_v46, %v2421_v46 }
0x15a1   :  { %v791_v49 = vpop.permute.xlu0 %790 }
0x15a2   :  { %v793_v51 = vmul.f32 %v2051_v48, %v791_v49  ;;  %1021 = vrot.lane.b32.xlu1 %v1019_v47, %s2114_s3 }
0x15a4   :  { %795 = vrot.lane.b32.xlu0 %v793_v51, %s2113_s25 }
0x1614   :  { %v1022_v52 = vpop.permute.xlu1 %1021 }
0x1615   :  { %1900 = vmatmul.mubr.msk.bf16.vlgmr.msra.gmra.mrb[24].mxu1 %vm79_vm1, %v1022_v52 }
0x1616   :  { %v796_v53 = vpop.permute.xlu0 %795  ;;  %1912 = vmatpush3.bf16.msra.mxu1 %v2377_v10  ;;  %1915 = vmatprep.mubr.msk.bf16.mxu1 %vm2111_vm0, %v2110_v1 }
0x1617   :  { %v798_v55 = vadd.f32 %v796_v53, %v788_v0  ;;  %1913 = vmatprep.subr.bf16.mxu1 %v2110_v1 }
0x1619   :  { %2052 = vtanh.f32 %v798_v55 }
0x161a   :  { %1914 = vmatpush3.bf16.msra.mxu1 %v2385_v14 }
0x161b   :  { %1927 = vmatprep.subr.bf16.mxu1 %v2110_v1 }
0x1623   :  { %v2053_v56 = vpop.eup %2052 }
0x1624   :  { %801 = vrot.lane.b32.xlu0 %v2053_v56, %s2113_s25 }
0x1628   :  { %569 = vrot.lane.b32.xlu0 %v2318_v17, %s2114_s3 }
0x162c   :  { %727 = vrot.lane.b32.xlu0 %v2366_v59, %s2114_s3 }
0x1696   :  { %v802_v54 = vpop.permute.xlu0 %801 }
0x1697   :  { %v804_v22 = vmul.f32 %v2051_v48, %v802_v54  ;;  %v908_v54 = vadd.f32 %v2405_v20, %v2414_v26 }
0x169a   :  { %v570_v57 = vpop.permute.xlu0 %569 }
0x169b   :  { %573 = vst.msk [vmem:[#allocation2 + $0x20] sm:$0xff] %vm79_vm1, %v570_v57 }
0x169e   :  { %v728_v35 = vpop.permute.xlu0 %727 }
0x169f   :  { %731 = vst.msk [vmem:[#allocation2 + $0x30] sm:$0xff] %vm79_vm1, %v728_v35 }
0x16a2   :  { %v815_v27 = vld [vmem:[#allocation2 + $0x20] sm:$0xff] }
0x16a6   :  { %v817_v4 = vld [vmem:[#allocation2 + $0x30] sm:$0xff] }
0x16e8   :  { %v1060_v58 = vpop.f32.mrb[24].mxu1 }
0x16e9   :  { %v1066_v60 = vadd.f32 %v1060_v58, %v900_v29  ;;  %v1901_v61 = vpop.f32.mrb[25].mxu1 }
0x16ea   :  { %v1063_v63 = vpop.f32.mrb[26].mxu1 }
0x16eb   :  { %2054 = vtanh.f32 %v1066_v60  ;;  %v1902_v7 = vpop.f32.mrb[27].mxu1  ;;  %v1719_v59 = vmul.f32 -1.442695, %v1066_v60 }
0x16ed   :  { %2056 = vpow2.f32 %v1719_v59 }
0x16f5   :  { %v2055_v17 = vpop.eup %2054 }
0x16f6   :  { %1076 = vrot.lane.b32.xlu1 %v2055_v17, %s2113_s25 }
0x16f7   :  { %v2057_v8 = vpop.eup %2056 }
0x16f8   :  { %v1070_v62 = vadd.f32 1.0, %v2057_v8 }
0x16fa   :  { %2058 = vrcp.f32 %v1070_v62 }
0x1704   :  { %v2059_v50 = vpop.eup %2058 }
0x1705   :  { %v1074_v15 = vmul.f32 %v2059_v50, %v1006_v40 }
0x1768   :  { %v1077_v9 = vpop.permute.xlu1 %1076 }
0x1769   :  { %v1079_v3 = vmul.f32 %v2059_v50, %v1077_v9 }
0x176b   :  { %1081 = vrot.lane.b32.xlu1 %v1079_v3, %s2113_s25 }
0x17dd   :  { %v1082_v19 = vpop.permute.xlu1 %1081 }
0x17de   :  { %v1084_v21 = vadd.f32 %v1082_v19, %v1074_v15 }
0x17e0   :  { %2060 = vtanh.f32 %v1084_v21 }
0x17ea   :  { %v2061_v11 = vpop.eup %2060 }
0x17eb   :  { %1087 = vrot.lane.b32.xlu1 %v2061_v11, %s2113_s25 }
0x17ef   :  { %648 = vrot.lane.b32.xlu1 %v2335_v37, %s2114_s3 }
0x17f3   :  { %806 = vrot.lane.b32.xlu1 %v804_v22, %s2114_s3 }
0x185d   :  { %v1088_v23 = vpop.permute.xlu1 %1087 }
0x185e   :  { %v2450_v24 = vmul.f32 %v2059_v50, %v1088_v23 }
0x1860   :  { %v1097_v13 = vpack.c.bf16 %v2450_v24, %v2450_v24 }
0x1861   :  { %v649_v25 = vpop.permute.xlu1 %648 }
0x1862   :  { %652 = vst.msk [vmem:[#allocation2 + $0x28] sm:$0xff] %vm79_vm1, %v649_v25  ;;  %1099 = vrot.lane.b32.xlu0 %v1097_v13, %s2114_s3 }
0x1865   :  { %v807_v2 = vpop.permute.xlu1 %806 }
0x1866   :  { %810 = vst.msk [vmem:[#allocation2 + $0x38] sm:$0xff] %vm79_vm1, %v807_v2 }
0x1869   :  { %v816_v28 = vld [vmem:[#allocation2 + $0x28] sm:$0xff] }
0x186a   :  { %v830_v37 = vpack.c.bf16 %v816_v28, %v815_v27 }
0x186c   :  { %1883 = vmatprep.mubr.msk.bf16.mxu0 %vm79_vm1, %v830_v37 }
0x186d   :  { %v818_v30 = vld [vmem:[#allocation2 + $0x38] sm:$0xff] }
0x186e   :  { %v831_v31 = vpack.c.bf16 %v818_v30, %v817_v4 }
0x1870   :  { %1884 = vmatmul.mubr.msk.bf16.gmra.mrb[24].mxu0 %vm79_vm1, %v831_v31 }
0x1871   :  { %1907 = vmatprep.mubr.msk.bf16.mxu0 %vm2111_vm0, %v2110_v1 }
0x18d4   :  { %v1100_v6 = vpop.permute.xlu0 %1099 }
0x18d5   :  { %1908 = vmatmul.mubr.msk.bf16.vlgmr.msra.gmra.mrb[28].mxu0 %vm79_vm1, %v1100_v6 }
0x18d6   :  { %1920 = vmatpush3.bf16.msra.mxu0 %v2377_v10  ;;  %1923 = vmatprep.mubr.msk.bf16.mxu0 %vm2111_vm0, %v2110_v1 }
0x18d7   :  { %1921 = vmatprep.subr.bf16.mxu0 %v2110_v1 }
0x18da   :  { %1922 = vmatpush3.bf16.msra.mxu0 %v2385_v14 }
0x18db   :  { %1935 = vmatprep.subr.bf16.mxu0 %v2110_v1 }
0x1943   :  { %v2468_v12 = vpop.f32.mrb[24].mxu0 }
0x1944   :  { %v2470_v5 = vpop.f32.mrb[25].mxu0 }
0x1945   :  { %v2472_v32 = vpop.f32.mrb[26].mxu0  ;;  %v913_v22 = vadd.f32 %v2414_v26, %v2470_v5 }
0x1946   :  { %v2474_v33 = vpop.f32.mrb[27].mxu0 }
0x19a8   :  { %v1138_v36 = vpop.f32.mrb[28].mxu0 }
0x19a9   :  { %v1144_v38 = vadd.f32 %v1138_v36, %v905_v34  ;;  %v1909_v39 = vpop.f32.mrb[29].mxu0 }
0x19aa   :  { %v1141_v40 = vpop.f32.mrb[30].mxu0 }
0x19ab   :  { %2062 = vtanh.f32 %v1144_v38  ;;  %v1910_v41 = vpop.f32.mrb[31].mxu0  ;;  %v1721_v43 = vmul.f32 -1.442695, %v1144_v38 }
0x19ad   :  { %2064 = vpow2.f32 %v1721_v43 }
0x19b5   :  { %v2063_v42 = vpop.eup %2062 }
0x19b6   :  { %1154 = vrot.lane.b32.xlu1 %v2063_v42, %s2113_s25 }
0x19b7   :  { %v2065_v44 = vpop.eup %2064 }
0x19b8   :  { %v1148_v45 = vadd.f32 1.0, %v2065_v44  ;;  %v916_v44 = vadd.f32 %v2414_v26, %v2474_v33 }
0x19ba   :  { %2066 = vrcp.f32 %v1148_v45 }
0x19c4   :  { %v2067_v18 = vpop.eup %2066 }
0x19c5   :  { %v1152_v16 = vmul.f32 %v2067_v18, %v1084_v21 }
0x1a28   :  { %v1155_v47 = vpop.permute.xlu1 %1154 }
0x1a29   :  { %v1157_v48 = vmul.f32 %v2067_v18, %v1155_v47 }
0x1a2b   :  { %1159 = vrot.lane.b32.xlu0 %v1157_v48, %s2113_s25 }
0x1a9d   :  { %v1160_v49 = vpop.permute.xlu0 %1159 }
0x1a9e   :  { %v1162_v51 = vadd.f32 %v1160_v49, %v1152_v16 }
0x1aa0   :  { %2068 = vtanh.f32 %v1162_v51 }
0x1aaa   :  { %v2069_v52 = vpop.eup %2068 }
0x1aab   :  { %1165 = vrot.lane.b32.xlu1 %v2069_v52, %s2113_s25 }
0x1b1d   :  { %v1166_v0 = vpop.permute.xlu1 %1165 }
0x1b1e   :  { %v2481_v53 = vmul.f32 %v2067_v18, %v1166_v0 }
0x1b20   :  { %v1175_v55 = vpack.c.bf16 %v2481_v53, %v2481_v53 }
0x1b22   :  { %1177 = vrot.lane.b32.xlu0 %v1175_v55, %s2114_s3 }
0x1b94   :  { %v1178_v56 = vpop.permute.xlu0 %1177 }
0x1b95   :  { %1916 = vmatmul.mubr.msk.bf16.vlgmr.msra.gmra.mrb[28].mxu1 %vm79_vm1, %v1178_v56 }
0x1b96   :  { %1928 = vmatpush3.bf16.msra.mxu1 %v2377_v10  ;;  %1931 = vmatprep.mubr.msk.bf16.mxu1 %vm2111_vm0, %v2110_v1 }
0x1b97   :  { %1929 = vmatprep.subr.bf16.mxu1 %v2110_v1 }
0x1b9a   :  { %1930 = vmatpush3.bf16.msra.mxu1 %v2385_v14 }
0x1b9b   :  { %1943 = vmatprep.subr.bf16.mxu1 %v2110_v1 }
0x1c68   :  { %v1216_v57 = vpop.f32.mrb[28].mxu1 }
0x1c69   :  { %v1222_v35 = vadd.f32 %v1216_v57, %v908_v54  ;;  %v1917_v29 = vpop.f32.mrb[29].mxu1 }
0x1c6a   :  { %v1219_v58 = vpop.f32.mrb[30].mxu1 }
0x1c6b   :  { %2070 = vtanh.f32 %v1222_v35  ;;  %v1918_v60 = vpop.f32.mrb[31].mxu1  ;;  %v1723_v63 = vmul.f32 -1.442695, %v1222_v35 }
0x1c6d   :  { %2072 = vpow2.f32 %v1723_v63 }
0x1c75   :  { %v2071_v61 = vpop.eup %2070 }
0x1c76   :  { %1232 = vrot.lane.b32.xlu1 %v2071_v61, %s2113_s25  ;;  %v921_v61 = vadd.f32 %v2468_v12, %v2414_v26 }
0x1c77   :  { %v2073_v7 = vpop.eup %2072 }
0x1c78   :  { %v1226_v17 = vadd.f32 1.0, %v2073_v7 }
0x1c7a   :  { %2074 = vrcp.f32 %v1226_v17 }
0x1c84   :  { %v2075_v59 = vpop.eup %2074 }
0x1c85   :  { %v1230_v20 = vmul.f32 %v2075_v59, %v1162_v51 }
0x1ce8   :  { %v1233_v8 = vpop.permute.xlu1 %1232 }
0x1ce9   :  { %v1235_v62 = vmul.f32 %v2075_v59, %v1233_v8 }
0x1ceb   :  { %1237 = vrot.lane.b32.xlu0 %v1235_v62, %s2113_s25 }
0x1d5d   :  { %v1238_v50 = vpop.permute.xlu0 %1237 }
0x1d5e   :  { %v1240_v9 = vadd.f32 %v1238_v50, %v1230_v20 }
0x1d60   :  { %2076 = vtanh.f32 %v1240_v9 }
0x1d6a   :  { %v2077_v3 = vpop.eup %2076 }
0x1d6b   :  { %1243 = vrot.lane.b32.xlu1 %v2077_v3, %s2113_s25 }
0x1ddd   :  { %v1244_v15 = vpop.permute.xlu1 %1243 }
0x1dde   :  { %v2498_v19 = vmul.f32 %v2075_v59, %v1244_v15 }
0x1de0   :  { %v1253_v21 = vpack.c.bf16 %v2498_v19, %v2498_v19 }
0x1de2   :  { %1255 = vrot.lane.b32.xlu0 %v1253_v21, %s2114_s3 }
0x1e54   :  { %v1256_v11 = vpop.permute.xlu0 %1255 }
0x1e55   :  { %1924 = vmatmul.mubr.msk.bf16.vlgmr.msra.gmra.mrb[32].mxu0 %vm79_vm1, %v1256_v11 }
0x1e56   :  { %1936 = vmatpush3.bf16.msra.mxu0 %v2377_v10  ;;  %1939 = vmatprep.mubr.msk.bf16.mxu0 %vm2111_vm0, %v2110_v1 }
0x1e57   :  { %1937 = vmatprep.subr.bf16.mxu0 %v2110_v1 }
0x1e5a   :  { %1938 = vmatpush3.bf16.msra.mxu0 %v2385_v14 }
0x1f28   :  { %v1294_v23 = vpop.f32.mrb[32].mxu0 }
0x1f29   :  { %v1300_v13 = vadd.f32 %v1294_v23, %v913_v22  ;;  %v1925_v25 = vpop.f32.mrb[33].mxu0 }
0x1f2a   :  { %v1297_v2 = vpop.f32.mrb[34].mxu0 }
0x1f2b   :  { %2078 = vtanh.f32 %v1300_v13  ;;  %v1926_v27 = vpop.f32.mrb[35].mxu0  ;;  %v1725_v37 = vmul.f32 -1.442695, %v1300_v13 }
0x1f2c   :  { %v924_v27 = vadd.f32 %v2472_v32, %v2414_v26 }
0x1f2d   :  { %2080 = vpow2.f32 %v1725_v37 }
0x1f35   :  { %v2079_v28 = vpop.eup %2078 }
0x1f36   :  { %1310 = vrot.lane.b32.xlu1 %v2079_v28, %s2113_s25 }
0x1f37   :  { %v2081_v4 = vpop.eup %2080 }
0x1f38   :  { %v1304_v30 = vadd.f32 1.0, %v2081_v4 }
0x1f3a   :  { %2082 = vrcp.f32 %v1304_v30 }
0x1f44   :  { %v2083_v31 = vpop.eup %2082 }
0x1f45   :  { %v1308_v5 = vmul.f32 %v2083_v31, %v1240_v9 }
0x1fa8   :  { %v1311_v6 = vpop.permute.xlu1 %1310 }
0x1fa9   :  { %v1313_v34 = vmul.f32 %v2083_v31, %v1311_v6 }
0x1fab   :  { %1315 = vrot.lane.b32.xlu0 %v1313_v34, %s2113_s25 }
0x201d   :  { %v1316_v36 = vpop.permute.xlu0 %1315 }
0x201e   :  { %v1318_v38 = vadd.f32 %v1316_v36, %v1308_v5 }
0x2020   :  { %2084 = vtanh.f32 %v1318_v38 }
0x202a   :  { %v2085_v39 = vpop.eup %2084 }
0x202b   :  { %1321 = vrot.lane.b32.xlu1 %v2085_v39, %s2113_s25 }
0x209d   :  { %v1322_v40 = vpop.permute.xlu1 %1321 }
0x209e   :  { %v2514_v41 = vmul.f32 %v2083_v31, %v1322_v40 }
0x20a0   :  { %v1331_v42 = vpack.c.bf16 %v2514_v41, %v2514_v41 }
0x20a2   :  { %1333 = vrot.lane.b32.xlu0 %v1331_v42, %s2114_s3 }
0x2114   :  { %v1334_v43 = vpop.permute.xlu0 %1333 }
0x2115   :  { %1932 = vmatmul.mubr.msk.bf16.vlgmr.msra.gmra.mrb[32].mxu1 %vm79_vm1, %v1334_v43 }
0x2116   :  { %1944 = vmatpush3.bf16.msra.mxu1 %v2377_v10  ;;  %1947 = vmatprep.mubr.msk.bf16.mxu1 %vm2111_vm0, %v2110_v1 }
0x2117   :  { %1945 = vmatprep.subr.bf16.mxu1 %v2110_v1 }
0x211a   :  { %1946 = vmatpush3.bf16.msra.mxu1 %v2385_v14 }
0x21e8   :  { %v1372_v45 = vpop.f32.mrb[32].mxu1 }
0x21e9   :  { %v1378_v18 = vadd.f32 %v1372_v45, %v916_v44  ;;  %v1933_v47 = vpop.f32.mrb[33].mxu1 }
0x21ea   :  { %v1375_v48 = vpop.f32.mrb[34].mxu1  ;;  %v1589_v47 = vld [vmem:[%s2606_s7 + $0x8] sm:$0xff] }
0x21eb   :  { %2086 = vtanh.f32 %v1378_v18  ;;  %v1934_v16 = vpop.f32.mrb[35].mxu1  ;;  %v1727_v10 = vmul.f32 -1.442695, %v1378_v18  ;;  %v1588_v18 = vld [vmem:[%s2606_s7] sm:$0xff] }
0x21ec   :  { %v1963_v48 = vpack.c.bf16 %v1589_v47, %v1588_v18 }
0x21ed   :  { %2088 = vpow2.f32 %v1727_v10 }
0x21f5   :  { %v2087_v49 = vpop.eup %2086 }
0x21f6   :  { %1388 = vrot.lane.b32.xlu1 %v2087_v49, %s2113_s25 }
0x21f7   :  { %v2089_v51 = vpop.eup %2088 }
0x21f8   :  { %v1382_v52 = vadd.f32 1.0, %v2089_v51 }
0x21fa   :  { %2090 = vrcp.f32 %v1382_v52 }
0x2204   :  { %v2091_v0 = vpop.eup %2090 }
0x2205   :  { %v1386_v33 = vmul.f32 %v2091_v0, %v1318_v38 }
0x2268   :  { %v1389_v55 = vpop.permute.xlu1 %1388 }
0x2269   :  { %v1391_v14 = vmul.f32 %v2091_v0, %v1389_v55 }
0x226b   :  { %1393 = vrot.lane.b32.xlu0 %v1391_v14, %s2113_s25 }
0x22dd   :  { %v1394_v56 = vpop.permute.xlu0 %1393 }
0x22de   :  { %v1396_v54 = vadd.f32 %v1394_v56, %v1386_v33 }
0x22e0   :  { %2092 = vtanh.f32 %v1396_v54 }
0x22ea   :  { %v2093_v57 = vpop.eup %2092 }
0x22eb   :  { %1399 = vrot.lane.b32.xlu1 %v2093_v57, %s2113_s25 }
0x235d   :  { %v1400_v35 = vpop.permute.xlu1 %1399 }
0x235e   :  { %v2530_v29 = vmul.f32 %v2091_v0, %v1400_v35 }
0x2360   :  { %v1409_v58 = vpack.c.bf16 %v2530_v29, %v2530_v29 }
0x2362   :  { %1411 = vrot.lane.b32.xlu0 %v1409_v58, %s2114_s3 }
0x23d4   :  { %v1412_v60 = vpop.permute.xlu0 %1411 }
0x23d5   :  { %1940 = vmatmul.mubr.msk.bf16.vlgmr.msra.gmra.mrb[36].mxu0 %vm79_vm1, %v1412_v60 }
0x23d6   :  { %1959 = vmatprep.mubr.msk.f32.mxu0 %vm2111_vm0, %v2110_v1 }
0x24a8   :  { %v1450_v63 = vpop.f32.mrb[36].mxu0 }
0x24a9   :  { %v1456_v7 = vadd.f32 %v1450_v63, %v921_v61  ;;  %v1941_v17 = vpop.f32.mrb[37].mxu0 }
0x24aa   :  { %v1453_v59 = vpop.f32.mrb[38].mxu0 }
0x24ab   :  { %2094 = vtanh.f32 %v1456_v7  ;;  %v1942_v8 = vpop.f32.mrb[39].mxu0  ;;  %v1729_v20 = vmul.f32 -1.442695, %v1456_v7 }
0x24ad   :  { %2096 = vpow2.f32 %v1729_v20 }
0x24b5   :  { %v2095_v62 = vpop.eup %2094 }
0x24b6   :  { %1466 = vrot.lane.b32.xlu1 %v2095_v62, %s2113_s25 }
0x24b7   :  { %v2097_v50 = vpop.eup %2096 }
0x24b8   :  { %v1460_v9 = vadd.f32 1.0, %v2097_v50 }
0x24ba   :  { %2098 = vrcp.f32 %v1460_v9 }
0x24c4   :  { %v2099_v3 = vpop.eup %2098 }
0x24c5   :  { %v1464_v12 = vmul.f32 %v2099_v3, %v1396_v54 }
0x2528   :  { %v1467_v15 = vpop.permute.xlu1 %1466 }
0x2529   :  { %v1469_v1 = vmul.f32 %v2099_v3, %v1467_v15 }
0x252b   :  { %1471 = vrot.lane.b32.xlu0 %v1469_v1, %s2113_s25 }
0x259d   :  { %v1472_v21 = vpop.permute.xlu0 %1471 }
0x259e   :  { %v1474_v11 = vadd.f32 %v1472_v21, %v1464_v12 }
0x25a0   :  { %2100 = vtanh.f32 %v1474_v11 }
0x25aa   :  { %v2101_v22 = vpop.eup %2100 }
0x25ab   :  { %1477 = vrot.lane.b32.xlu1 %v2101_v22, %s2113_s25 }
0x261d   :  { %v1478_v23 = vpop.permute.xlu1 %1477 }
0x261e   :  { %v1480_v13 = vmul.f32 %v2099_v3, %v1478_v23 }
0x2620   :  { %v1487_v25 = vpack.c.bf16 %v1480_v13, %v1480_v13 }
0x2622   :  { %1489 = vrot.lane.b32.xlu0 %v1487_v25, %s2114_s3 }
0x2694   :  { %v1490_v2 = vpop.permute.xlu0 %1489 }
0x2695   :  { %1948 = vmatmul.mubr.msk.bf16.vlgmr.msra.gmra.mrb[36].mxu1 %vm79_vm1, %v1490_v2 }
0x2768   :  { %v1528_v28 = vpop.f32.mrb[36].mxu1 }
0x2769   :  { %v1534_v37 = vadd.f32 %v1528_v28, %v924_v27  ;;  %v1949_v4 = vpop.f32.mrb[37].mxu1 }
0x276a   :  { %v1531_v30 = vpop.f32.mrb[38].mxu1 }
0x276b   :  { %2102 = vtanh.f32 %v1534_v37  ;;  %v1950_v31 = vpop.f32.mrb[39].mxu1  ;;  %v1731_v34 = vmul.f32 -1.442695, %v1534_v37 }
0x276d   :  { %2104 = vpow2.f32 %v1731_v34 }
0x2775   :  { %v2103_v6 = vpop.eup %2102 }
0x2776   :  { %1544 = vrot.lane.b32.xlu1 %v2103_v6, %s2113_s25 }
0x2777   :  { %v2105_v5 = vpop.eup %2104 }
0x2778   :  { %v1538_v36 = vadd.f32 1.0, %v2105_v5 }
0x277a   :  { %2106 = vrcp.f32 %v1538_v36 }
0x2784   :  { %v2107_v38 = vpop.eup %2106 }
0x2785   :  { %v1542_v26 = vmul.f32 %v2107_v38, %v1474_v11  ;;  %v1732_v11 = vld [vmem:[%s2607_s8] ss:$0 sm:$0xff] }
0x27e8   :  { %v1545_v39 = vpop.permute.xlu1 %1544 }
0x27e9   :  { %v1547_v40 = vmul.f32 %v2107_v38, %v1545_v39 }
0x27eb   :  { %1549 = vrot.lane.b32.xlu0 %v1547_v40, %s2113_s25 }
0x27ef   :  { %1014 = vrot.lane.b32.xlu0 %v2421_v46, %s2114_s3 }
0x27f3   :  { %1170 = vrot.lane.b32.xlu0 %v2481_v53, %s2114_s3 }
0x27f7   :  { %1326 = vrot.lane.b32.xlu0 %v2514_v41, %s2114_s3  ;;  %v2115_v41 = vmov 0.0|0.0  }
0x27f8   :  { %1962 = vmatprep.subr.bf16.mxu0 %v2115_v41 }
0x27f9   :  { %1964 = vmatpush3.bf16.msra.mxu0 %v1963_v48 }
0x27fa   :  { %1965 = vmatprep.subr.bf16.mxu0 %v2115_v41 }
0x27fb   :  { %1482 = vrot.lane.b32.xlu0 %v1480_v13, %s2114_s3 }
0x285d   :  { %v1550_v32 = vpop.permute.xlu0 %1549 }
0x285e   :  { %v1552_v42 = vadd.f32 %v1550_v32, %v1542_v26 }
0x2860   :  { %2108 = vtanh.f32 %v1552_v42 }
0x2861   :  { %v1015_v43 = vpop.permute.xlu0 %1014 }
0x2862   :  { %1017 = vst.msk [vmem:[#allocation2] sm:$0xff] %vm79_vm1, %v1015_v43 }
0x2865   :  { %v1171_v44 = vpop.permute.xlu0 %1170 }
0x2866   :  { %1173 = vst.msk [vmem:[#allocation2 + $0x10] sm:$0xff] %vm79_vm1, %v1171_v44 }
0x2869   :  { %v1327_v45 = vpop.permute.xlu0 %1326  ;;  %v1564_v14 = vld [vmem:[#allocation2] sm:$0xff] }
0x286a   :  { %v2109_v46 = vpop.eup %2108  ;;  %1329 = vst.msk [vmem:[#allocation2 + $0x20] sm:$0xff] %vm79_vm1, %v1327_v45  ;;  %v1572_v56 = vsel %vm79_vm1, %v1564_v14, 0.0 }
0x286b   :  { %1555 = vrot.lane.b32.xlu1 %v2109_v46, %s2113_s25 }
0x286d   :  { %v1483_v53 = vpop.permute.xlu0 %1482  ;;  %v1566_v54 = vld [vmem:[#allocation2 + $0x10] sm:$0xff] }
0x286e   :  { %1485 = vst.msk [vmem:[#allocation2 + $0x30] sm:$0xff] %vm79_vm1, %v1483_v53 }
0x286f   :  { %1092 = vrot.lane.b32.xlu1 %v2450_v24, %s2114_s3  ;;  %v1590_v24 = vld [vmem:[%s2606_s7 + $0x10] sm:$0xff] }
0x2871   :  { %v1568_v61 = vld [vmem:[#allocation2 + $0x20] sm:$0xff] }
0x2872   :  { %v1579_v17 = vsel %vm79_vm1, %v1568_v61, 0.0 }
0x2873   :  { %1248 = vrot.lane.b32.xlu1 %v2498_v19, %s2114_s3  ;;  %v1591_v19 = vld [vmem:[%s2606_s7 + $0x18] sm:$0xff] }
0x2874   :  { %v1966_v16 = vpack.c.bf16 %v1591_v19, %v1590_v24 }
0x2875   :  { %v1570_v20 = vld [vmem:[#allocation2 + $0x30] sm:$0xff] }
0x2876   :  { %1967 = vmatpush3.bf16.msra.mxu0 %v1966_v16  ;;  %v1583_v9 = vsel %vm79_vm1, %v1570_v20, 0.0 }
0x2877   :  { %1404 = vrot.lane.b32.xlu1 %v2530_v29, %s2114_s3  ;;  %v1575_v29 = vsel %vm79_vm1, %v1566_v54, 0.0 }
0x28dd   :  { %v1556_v49 = vpop.permute.xlu1 %1555 }
0x28de   :  { %v1558_v10 = vmul.f32 %v2107_v38, %v1556_v49 }
0x28e0   :  { %1560 = vrot.lane.b32.xlu1 %v1558_v10, %s2114_s3 }
0x28e1   :  { %v1093_v51 = vpop.permute.xlu1 %1092 }
0x28e2   :  { %1095 = vst.msk [vmem:[#allocation2 + $0x8] sm:$0xff] %vm79_vm1, %v1093_v51 }
0x28e5   :  { %v1249_v52 = vpop.permute.xlu1 %1248 }
0x28e6   :  { %1251 = vst.msk [vmem:[#allocation2 + $0x18] sm:$0xff] %vm79_vm1, %v1249_v52 }
0x28e9   :  { %v1405_v0 = vpop.permute.xlu1 %1404  ;;  %v1565_v55 = vld [vmem:[#allocation2 + $0x8] sm:$0xff] }
0x28ea   :  { %1407 = vst.msk [vmem:[#allocation2 + $0x28] sm:$0xff] %vm79_vm1, %v1405_v0  ;;  %v1573_v33 = vsel %vm79_vm1, %v1565_v55, 0.0 }
0x28eb   :  { %v1574_v57 = vadd.f32 %v1573_v33, %v1572_v56 }
0x28ed   :  { %v1567_v35 = vld [vmem:[#allocation2 + $0x18] sm:$0xff]  ;;  %v1576_v58 = vadd.f32 %v1575_v29, %v1574_v57 }
0x28ee   :  { %v1577_v60 = vsel %vm79_vm1, %v1567_v35, 0.0 }
0x28ef   :  { %v1578_v63 = vadd.f32 %v1577_v60, %v1576_v58 }
0x28f1   :  { %v1569_v7 = vld [vmem:[#allocation2 + $0x28] sm:$0xff]  ;;  %v1580_v8 = vadd.f32 %v1579_v17, %v1578_v63 }
0x28f2   :  { %v1581_v62 = vsel %vm79_vm1, %v1569_v7, 0.0 }
0x28f3   :  { %v1582_v50 = vadd.f32 %v1581_v62, %v1580_v8 }
0x28f5   :  { %v1584_v15 = vadd.f32 %v1583_v9, %v1582_v50 }
0x2952   :  { %v1561_v59 = vpop.permute.xlu1 %1560 }
0x2953   :  { %1563 = vst.msk [vmem:[#allocation2 + $0x38] sm:$0xff] %vm79_vm1, %v1561_v59 }
0x295a   :  { %v1571_v3 = vld [vmem:[#allocation2 + $0x38] sm:$0xff] }
0x295b   :  { %v1585_v1 = vsel %vm79_vm1, %v1571_v3, 0.0 }
0x295c   :  { %v1586_v12 = vadd.f32 %v1585_v1, %v1584_v15 }
0x295e   :  { %v1587_v21 = vmul.f32 0.125, %v1586_v12 }
0x2960   :  { %1960 = vmatmul.mubr.msk.f32.vlgmr.msra.gmra.mrb[40].mxu0 %vm79_vm1, %v1587_v21 }
0x2a33   :  { %v1668_v22 = vpop.f32.mrb[40].mxu0 }
0x2a34   :  { %v1669_v23 = vadd.f32 %v1732_v11, %v1668_v22  ;;  %v1961_v13 = vpop.f32.mrb[41].mxu0 }
0x2a36   :  { %1672 = vst [vmem:[%s2608_s9] sm:$0xff] %v1669_v23 }

</bundles_post_ra>
